<compile_context>
chip_gen: v6e
topology: v6e:2x2x1
jax: 0.10.0
libtpu: 0.0.40
codegen_flags: <defaults>
</compile_context>

<pallas_src>
import math
import functools

import jax
import jax.numpy as jnp
from jax.experimental import pallas as pl
from jax.experimental.pallas import tpu as pltpu


def _gelu_exact(x):
    # nn.GELU() default (erf-based, not tanh approximation)
    return 0.5 * x * (1.0 + jax.lax.erf(x * (1.0 / math.sqrt(2.0))))


def attentive_pooler_kernel(
    x_ref, q0_ref,
    n1w, n1b, wfused, bfused, emat,
    wproj_t, bproj, n2w, n2b, w1_t, b1, w2_t, b2,
    o_ref, *, hq_pad, compute_dtype,
):
    Bt, N, D = x_ref.shape
    nq = q0_ref.shape[0]
    cdt = compute_dtype

    # ---- norm1(x): stats in f32, produce the bf16 slab directly (x dies, no dup f32) ----
    x = x_ref[...].astype(jnp.float32)                                # (Bt, N, D)
    mu = jnp.mean(x, axis=-1, keepdims=True)
    xc = x - mu
    var = jnp.mean(xc * xc, axis=-1, keepdims=True)
    xn2 = (xc * jax.lax.rsqrt(var + 1e-5) * n1w[...] + n1b[...]
           ).reshape(Bt * N, D).astype(cdt)                           # (Bt*N, D)

    # ---- one fused MXU matmul: [score columns (query+K folded, scaled) | V projection] ----
    r = jnp.dot(xn2, wfused[...], preferred_element_type=jnp.float32) + bfused[...]
    s = r[:, :hq_pad].reshape(Bt, N, hq_pad)                          # scores, lane-dense
    v = r[:, hq_pad:]                                                 # (Bt*N, D) values, f32

    # ---- softmax over keys (axis=1 sublane reduce; no transpose, rcp on the EUP) ----
    s = s - jnp.max(s, axis=1, keepdims=True)
    p = jnp.exp(s)
    p = p * pl.reciprocal(jnp.sum(p, axis=1, keepdims=True), approx=True)  # (Bt, N, hq_pad)

    # ---- expand per-(head,query) probs to per-(query,channel) weights via a constant
    #      0/1 selection matrix (staged once on the MXU across the whole slab) ----
    pexp = jnp.dot(p.reshape(Bt * N, hq_pad).astype(cdt), emat[...],
                   preferred_element_type=jnp.float32)                # (Bt*N, nq*D)

    # ---- attention output on the VPU: o[b,q,d] = sum_n p[b,n,head(d)*nq+q] * v[b,n,d] ----
    o = jnp.sum(pexp.reshape(Bt, N, nq, D) * v.reshape(Bt, N, 1, D), axis=1)  # (Bt, nq, D)

    # ---- output projection + residual 1 ----
    of = o.reshape(Bt * nq, D).astype(cdt)
    y = jnp.dot(of, wproj_t[...], preferred_element_type=jnp.float32) + bproj[...]
    q1 = q0_ref[...].astype(jnp.float32)[None] + y.reshape(Bt, nq, D)

    # ---- norm2 + MLP + residual 2 ----
    q1f = q1.reshape(Bt * nq, D)
    mu2 = jnp.mean(q1f, axis=-1, keepdims=True)
    qc = q1f - mu2
    var2 = jnp.mean(qc * qc, axis=-1, keepdims=True)
    qn = (qc * jax.lax.rsqrt(var2 + 1e-5) * n2w[...] + n2b[...]).astype(cdt)
    h1 = jnp.dot(qn, w1_t[...], preferred_element_type=jnp.float32) + b1[...]
    h1 = _gelu_exact(h1).astype(cdt)
    m = jnp.dot(h1, w2_t[...], preferred_element_type=jnp.float32) + b2[...]

    o_ref[...] = (q1 + m.reshape(Bt, nq, D)).astype(o_ref.dtype)


def _vmem_budget():
    # Physical VMEM minus headroom for compiler scratch / semaphores / output buffers:
    # ~48 MiB on 64-MiB v7x parts, ~100 MiB on 128-MiB v5e/v6e parts.
    try:
        physical = int(pltpu.get_tpu_info().vmem_capacity_bytes)
    except Exception:
        physical = 64 << 20
    return max(32 << 20, min(physical - (16 << 20), int(physical * 0.8)))


def _vmem_estimate(bt, N, D, nq, Hm, hq_pad, x_bytes, out_bytes, wbufs):
    """Bytes estimate from actual spec sizes + in-kernel intermediates."""
    f32, bf = 4, 2
    weights = (D * (hq_pad + D) + hq_pad * nq * D + D * D + D * Hm + Hm * D) * bf * wbufs
    smalls = (nq * D + 4 * D + (hq_pad + D) + Hm + D) * f32 * wbufs
    x_tile = bt * N * D * x_bytes * 2                    # double-buffered x stream
    out_tile = bt * nq * D * out_bytes * 2               # double-buffered output
    interm = (bt * N * (2 * D + (hq_pad + D) + 2 * hq_pad + 2 * nq * D) * f32
              + bt * nq * (3 * D + Hm) * f32)
    return weights + smalls + x_tile + out_tile + interm


def _pick_block_b(B, fits):
    # Largest batch tile that fits VMEM, preferring >=2 grid steps with an even count
    # so the "parallel" axis can span both v7x TensorCores.
    best_odd = None
    for bt in range(B, 0, -1):
        if B % bt or not fits(bt):
            continue
        steps = B // bt
        if steps >= 2 and steps % 2 == 0:
            return bt
        if best_odd is None and steps >= 2:
            best_odd = bt
    if best_odd is not None:
        return best_odd
    for bt in range(B, 0, -1):
        if B % bt == 0 and fits(bt):
            return bt
    return 1


def attentive_pooler(x, params, num_heads, *, block_b=None, compute_dtype=jnp.bfloat16):
    B, N, D = x.shape
    assert D % num_heads == 0
    H = num_heads
    hd = D // H
    scale = hd ** (-0.5)
    out_dtype = x.dtype

    query = params["query"].astype(jnp.float32)                     # (nq, D)
    nq = query.shape[0]
    Hm = params["w1"].shape[0]
    HQ = H * nq
    hq_pad = ((HQ + 127) // 128) * 128                              # lane-dense score cols

    # ---------- batch-independent precomputation (hoisted out of the kernel) ----------
    # query projection, then fold query + K projection (+ scale) into score weights
    ql = query @ params["wq"].astype(jnp.float32).T + params["bq"].reshape(1, -1).astype(jnp.float32)
    ql_heads = ql.reshape(nq, H, hd)
    wk_r = params["wkv"][:D].astype(jnp.float32).reshape(H, hd, D)
    bk_r = params["bkv"].reshape(-1)[:D].astype(jnp.float32).reshape(H, hd)
    wsc = (scale * jnp.einsum("hjd,qhj->dhq", wk_r, ql_heads)).reshape(D, HQ)
    csc = (scale * jnp.einsum("hj,qhj->hq", bk_r, ql_heads)).reshape(HQ)
    # NOTE: wsc is a bf16-rounded product of two weight matrices; validate tolerance at
    # production D if scores are large.  Zero-padded to hq_pad columns (lane-aligned slices).

    wv_t = params["wkv"][D:].astype(jnp.float32).T                  # (D_in, D_out)
    bv = params["bkv"].reshape(-1)[D:].astype(jnp.float32)

    wfused = jnp.zeros((D, hq_pad + D), jnp.float32)
    wfused = wfused.at[:, :HQ].set(wsc).at[:, hq_pad:].set(wv_t).astype(compute_dtype)
    bfused = jnp.zeros((1, hq_pad + D), jnp.float32)
    bfused = bfused.at[0, :HQ].set(csc).at[0, hq_pad:].set(bv)

    # selection matrix: pexp[., q*D + d] = p[., head(d)*nq + q]; padded rows are zero
    d_idx = jnp.arange(D)
    sel = (d_idx[None, :] // hd) * nq + jnp.arange(nq)[:, None]     # (nq, D)
    emat = (jnp.arange(hq_pad)[:, None, None] == sel[None]
            ).astype(compute_dtype).reshape(hq_pad, nq * D)

    wproj_t = params["wproj"].T.astype(compute_dtype)               # (D, D)
    w1_t = params["w1"].T.astype(compute_dtype)                     # (D, Hm)
    w2_t = params["w2"].T.astype(compute_dtype)                     # (Hm, D)

    def row(p):
        return p.reshape(1, -1).astype(jnp.float32)

    n1w, n1b = row(params["n1w"]), row(params["n1b"])
    n2w, n2b = row(params["n2w"]), row(params["n2b"])
    bproj, b1, b2 = row(params["bproj"]), row(params["b1"]), row(params["b2"])

    # stream x in bf16: halves HBM traffic + VMEM of the only per-step streamed tensor
    x_in = x.astype(compute_dtype)

    budget = _vmem_budget()
    x_bytes = jnp.dtype(compute_dtype).itemsize
    out_bytes = jnp.dtype(out_dtype).itemsize

    def fits_fn(wbufs):
        return lambda bt: _vmem_estimate(bt, N, D, nq, Hm, hq_pad,
                                         x_bytes, out_bytes, wbufs) <= budget

    bt_single = block_b if block_b is not None else _pick_block_b(B, fits_fn(1))
    bt_double = block_b if block_b is not None else _pick_block_b(B, fits_fn(2))

    kernel = functools.partial(attentive_pooler_kernel,
                               hq_pad=hq_pad, compute_dtype=compute_dtype)

    def run(single_buffer_weights, bt):
        # TODO(synk): non-divisible batch sizes need a padded / masked tail path.
        assert B % bt == 0, "batch must be divisible by block_b"
        grid = (B // bt,)

        def const_spec(shape):
            n = len(shape)
            idx = lambda b, n=n: (0,) * n
            if single_buffer_weights:
                # constant index map -> DMA'd once; single buffer halves weight VMEM
                return pl.BlockSpec(shape, idx, pipeline_mode=pl.Buffered(1))
            return pl.BlockSpec(shape, idx)

        in_specs = [
            pl.BlockSpec((bt, N, D), lambda b: (b, 0, 0)),          # x tile (streamed)
            const_spec((nq, D)),                                    # query tokens (residual)
            const_spec((1, D)), const_spec((1, D)),                 # norm1 w, b
            const_spec((D, hq_pad + D)), const_spec((1, hq_pad + D)),  # fused [score|V] w, b
            const_spec((hq_pad, nq * D)),                           # selection matrix
            const_spec((D, D)), const_spec((1, D)),                 # out proj
            const_spec((1, D)), const_spec((1, D)),                 # norm2 w, b
            const_spec((D, Hm)), const_spec((1, Hm)),               # fc1
            const_spec((Hm, D)), const_spec((1, D)),                # fc2
        ]

        return pl.pallas_call(
            kernel,
            out_shape=jax.ShapeDtypeStruct((B, nq, D), out_dtype),
            grid=grid,
            in_specs=in_specs,
            out_specs=pl.BlockSpec((bt, nq, D), lambda b: (b, 0, 0)),
            compiler_params=pltpu.CompilerParams(
                dimension_semantics=("parallel",),
                vmem_limit_bytes=int(budget),
            ),
        )(
            x_in, query,
            n1w, n1b, wfused, bfused, emat,
            wproj_t, bproj, n2w, n2b, w1_t, b1, w2_t, b2,
        )

    try:
        out = run(True, bt_single)
        jax.block_until_ready(out)
        return out
    except Exception:
        # pipeline_mode / Buffered(1) unsupported (or rejected) -> default double buffering
        return run(False, bt_double)


def init_params(key, D, num_heads, nq, mlp_ratio=4.0, init_std=0.02):
    Hm = int(D * mlp_ratio)
    ks = jax.random.split(key, 6)

    def tn(k, shape):
        # deterministic trunc_normal_(std=init_std) analogue
        return jax.random.truncated_normal(k, -2.0, 2.0, shape, jnp.float32) * init_std

    return dict(
        query=tn(ks[0], (nq, D)),
        n1w=jnp.ones((1, D), jnp.float32), n1b=jnp.zeros((1, D), jnp.float32),
        wq=tn(ks[1], (D, D)), bq=jnp.zeros((1, D), jnp.float32),
        wkv=tn(ks[2], (2 * D, D)), bkv=jnp.zeros((1, 2 * D), jnp.float32),
        # _rescale_blocks: proj.weight /= sqrt(2*1), mlp.fc2.weight /= sqrt(2*1)
        wproj=tn(ks[3], (D, D)) / math.sqrt(2.0), bproj=jnp.zeros((1, D), jnp.float32),
        n2w=jnp.ones((1, D), jnp.float32), n2b=jnp.zeros((1, D), jnp.float32),
        w1=tn(ks[4], (Hm, D)), b1=jnp.zeros((1, Hm), jnp.float32),
        w2=tn(ks[5], (D, Hm)) / math.sqrt(2.0), b2=jnp.zeros((1, D), jnp.float32),
    )


def reference(x, params, num_heads):
    """Pure-JAX f32 reference mirroring the PyTorch forward (correctness check)."""
    def ln(v, w, b):
        mu = v.mean(-1, keepdims=True)
        var = ((v - mu) ** 2).mean(-1, keepdims=True)
        return (v - mu) / jnp.sqrt(var + 1e-5) * w + b

    B, N, D = x.shape
    nq = params["query"].shape[0]
    hd = D // num_heads
    q0 = jnp.broadcast_to(params["query"][None], (B, nq, D))

    xn = ln(x, params["n1w"][0], params["n1b"][0])
    ql = q0 @ params["wq"].T + params["bq"][0]
    kv = xn @ params["wkv"].T + params["bkv"][0]
    k, v = kv[..., :D], kv[..., D:]
    qh = ql.reshape(B, nq, num_heads, hd).transpose(0, 2, 1, 3)
    kh = k.reshape(B, N, num_heads, hd).transpose(0, 2, 1, 3)
    vh = v.reshape(B, N, num_heads, hd).transpose(0, 2, 1, 3)
    s = (qh @ kh.transpose(0, 1, 3, 2)) * (hd ** -0.5)
    p = jax.nn.softmax(s, axis=-1)
    o = (p @ vh).transpose(0, 2, 1, 3).reshape(B, nq, D)
    y = o @ params["wproj"].T + params["bproj"][0]
    q1 = q0 + y
    qn = ln(q1, params["n2w"][0], params["n2b"][0])
    h1 = jax.nn.gelu(qn @ params["w1"].T + params["b1"][0], approximate=False)
    m = h1 @ params["w2"].T + params["b2"][0]
    return q1 + m


if __name__ == "__main__":
    B, N, D = 4, 16, 32       # batch, seq len of x, embed dim
    num_heads = 4             # head_dim = 8
    nq = 1                    # num_queries

    key = jax.random.PRNGKey(0)
    kx, kp = jax.random.split(key)
    x = jax.random.normal(kx, (B, N, D), jnp.float32)
    params = init_params(kp, D, num_heads, nq)

    out = attentive_pooler(x, params, num_heads)   # block_b auto -> 2 (even grid of 2 steps)
    out = jax.block_until_ready(out)

    ref = reference(x, params, num_heads)
    assert out.shape == (B, nq, D)
    max_err = float(jnp.max(jnp.abs(out - ref)))
    # bf16 streamed x + bf16 MXU operands + approx reciprocal => slightly loosened f32 tol
    assert jnp.allclose(out, ref, atol=5e-3, rtol=3e-2), f"mismatch, max abs err={max_err}"
    print("KERNEL_OK")
</pallas_src>

<mosaic_0001>
module attributes {stable_mosaic.version = 11 : i64} {
  func.func @attentive_pooler_kernel(%arg0: i32, %arg1: memref<2x16x32xbf16, #tpu.memory_space<vmem>>, %arg2: memref<1x32xf32, #tpu.memory_space<vmem>>, %arg3: memref<1x32xf32, #tpu.memory_space<vmem>>, %arg4: memref<1x32xf32, #tpu.memory_space<vmem>>, %arg5: memref<32x160xbf16, #tpu.memory_space<vmem>>, %arg6: memref<1x160xf32, #tpu.memory_space<vmem>>, %arg7: memref<128x32xbf16, #tpu.memory_space<vmem>>, %arg8: memref<32x32xbf16, #tpu.memory_space<vmem>>, %arg9: memref<1x32xf32, #tpu.memory_space<vmem>>, %arg10: memref<1x32xf32, #tpu.memory_space<vmem>>, %arg11: memref<1x32xf32, #tpu.memory_space<vmem>>, %arg12: memref<32x128xbf16, #tpu.memory_space<vmem>>, %arg13: memref<1x128xf32, #tpu.memory_space<vmem>>, %arg14: memref<128x32xbf16, #tpu.memory_space<vmem>>, %arg15: memref<1x32xf32, #tpu.memory_space<vmem>>, %arg16: memref<2x1x32xf32, #tpu.memory_space<vmem>>) attributes {dimension_semantics = [#tpu.dimension_semantics<parallel>], iteration_bounds = array<i64: 2>, scalar_prefetch = 0 : i64, scratch_operands = 0 : i64, tpu.core_type = #tpu.core_type<tc>, window_params = [{transform_indices = @transform_0, window_bounds = array<i64: 2, 16, 32>}, {pipeline_mode = #tpu.pipeline_mode<synchronous>, transform_indices = @transform_1, window_bounds = array<i64: 1, 32>}, {pipeline_mode = #tpu.pipeline_mode<synchronous>, transform_indices = @transform_2, window_bounds = array<i64: 1, 32>}, {pipeline_mode = #tpu.pipeline_mode<synchronous>, transform_indices = @transform_3, window_bounds = array<i64: 1, 32>}, {pipeline_mode = #tpu.pipeline_mode<synchronous>, transform_indices = @transform_4, window_bounds = array<i64: 32, 160>}, {pipeline_mode = #tpu.pipeline_mode<synchronous>, transform_indices = @transform_5, window_bounds = array<i64: 1, 160>}, {pipeline_mode = #tpu.pipeline_mode<synchronous>, transform_indices = @transform_6, window_bounds = array<i64: 128, 32>}, {pipeline_mode = #tpu.pipeline_mode<synchronous>, transform_indices = @transform_7, window_bounds = array<i64: 32, 32>}, {pipeline_mode = #tpu.pipeline_mode<synchronous>, transform_indices = @transform_8, window_bounds = array<i64: 1, 32>}, {pipeline_mode = #tpu.pipeline_mode<synchronous>, transform_indices = @transform_9, window_bounds = array<i64: 1, 32>}, {pipeline_mode = #tpu.pipeline_mode<synchronous>, transform_indices = @transform_10, window_bounds = array<i64: 1, 32>}, {pipeline_mode = #tpu.pipeline_mode<synchronous>, transform_indices = @transform_11, window_bounds = array<i64: 32, 128>}, {pipeline_mode = #tpu.pipeline_mode<synchronous>, transform_indices = @transform_12, window_bounds = array<i64: 1, 128>}, {pipeline_mode = #tpu.pipeline_mode<synchronous>, transform_indices = @transform_13, window_bounds = array<i64: 128, 32>}, {pipeline_mode = #tpu.pipeline_mode<synchronous>, transform_indices = @transform_14, window_bounds = array<i64: 1, 32>}, {transform_indices = @transform_15, window_bounds = array<i64: 2, 1, 32>}]} {
    %c0 = arith.constant 0 : index
    %c0_0 = arith.constant 0 : index
    %c0_1 = arith.constant 0 : index
    %0 = vector.load %arg1[%c0, %c0_0, %c0_1] : memref<2x16x32xbf16, #tpu.memory_space<vmem>>, vector<2x16x32xbf16>
    %1 = arith.extf %0 : vector<2x16x32xbf16> to vector<2x16x32xf32>
    %cst = arith.constant dense<0.000000e+00> : vector<2x16xf32>
    %2 = vector.multi_reduction <add>, %1, %cst [2] : vector<2x16x32xf32> to vector<2x16xf32>
    %3 = vector.shape_cast %2 : vector<2x16xf32> to vector<2x16x1xf32>
    %cst_2 = arith.constant 3.200000e+01 : f32
    %4 = vector.broadcast %cst_2 : f32 to vector<2x16x1xf32>
    %5 = arith.divf %3, %4 : vector<2x16x1xf32>
    %6 = vector.broadcast %5 : vector<2x16x1xf32> to vector<2x16x32xf32>
    %7 = arith.subf %1, %6 : vector<2x16x32xf32>
    %8 = arith.mulf %7, %7 : vector<2x16x32xf32>
    %cst_3 = arith.constant dense<0.000000e+00> : vector<2x16xf32>
    %9 = vector.multi_reduction <add>, %8, %cst_3 [2] : vector<2x16x32xf32> to vector<2x16xf32>
    %10 = vector.shape_cast %9 : vector<2x16xf32> to vector<2x16x1xf32>
    %cst_4 = arith.constant 3.200000e+01 : f32
    %11 = vector.broadcast %cst_4 : f32 to vector<2x16x1xf32>
    %12 = arith.divf %10, %11 : vector<2x16x1xf32>
    %cst_5 = arith.constant 9.99999974E-6 : f32
    %13 = vector.broadcast %cst_5 : f32 to vector<2x16x1xf32>
    %14 = arith.addf %12, %13 : vector<2x16x1xf32>
    %15 = math.rsqrt %14 : vector<2x16x1xf32>
    %16 = vector.broadcast %15 : vector<2x16x1xf32> to vector<2x16x32xf32>
    %17 = arith.mulf %7, %16 : vector<2x16x32xf32>
    %c0_6 = arith.constant 0 : index
    %c0_7 = arith.constant 0 : index
    %18 = vector.load %arg3[%c0_6, %c0_7] : memref<1x32xf32, #tpu.memory_space<vmem>>, vector<1x32xf32>
    %19 = vector.shape_cast %18 : vector<1x32xf32> to vector<1x1x32xf32>
    %20 = vector.broadcast %19 : vector<1x1x32xf32> to vector<2x16x32xf32>
    %21 = arith.mulf %17, %20 : vector<2x16x32xf32>
    %c0_8 = arith.constant 0 : index
    %c0_9 = arith.constant 0 : index
    %22 = vector.load %arg4[%c0_8, %c0_9] : memref<1x32xf32, #tpu.memory_space<vmem>>, vector<1x32xf32>
    %23 = vector.shape_cast %22 : vector<1x32xf32> to vector<1x1x32xf32>
    %24 = vector.broadcast %23 : vector<1x1x32xf32> to vector<2x16x32xf32>
    %25 = arith.addf %21, %24 : vector<2x16x32xf32>
    %26 = vector.shape_cast %25 : vector<2x16x32xf32> to vector<32x32xf32>
    %27 = arith.truncf %26 : vector<32x32xf32> to vector<32x32xbf16>
    %c0_10 = arith.constant 0 : index
    %c0_11 = arith.constant 0 : index
    %28 = vector.load %arg5[%c0_10, %c0_11] : memref<32x160xbf16, #tpu.memory_space<vmem>>, vector<32x160xbf16>
    %cst_12 = arith.constant dense<0.000000e+00> : vector<32x160xf32>
    %29 = tpu.matmul %27, %28, %cst_12 {dimension_numbers = #tpu.dot_dimension_numbers<[1], [0], [0], [1], [0, 0, 1, 1], [], []>} : vector<32x32xbf16>, vector<32x160xbf16>, vector<32x160xf32> -> vector<32x160xf32>
    %c0_13 = arith.constant 0 : index
    %c0_14 = arith.constant 0 : index
    %30 = vector.load %arg6[%c0_13, %c0_14] : memref<1x160xf32, #tpu.memory_space<vmem>>, vector<1x160xf32>
    %31 = vector.broadcast %30 : vector<1x160xf32> to vector<32x160xf32>
    %32 = arith.addf %29, %31 : vector<32x160xf32>
    %33 = vector.extract_strided_slice %32 {offsets = [0, 0], sizes = [32, 128], strides = [1, 1]} : vector<32x160xf32> to vector<32x128xf32>
    %34 = vector.shape_cast %33 : vector<32x128xf32> to vector<2x16x128xf32>
    %35 = vector.extract_strided_slice %32 {offsets = [0, 128], sizes = [32, 32], strides = [1, 1]} : vector<32x160xf32> to vector<32x32xf32>
    %cst_15 = arith.constant dense<0xFF800000> : vector<2x128xf32>
    %36 = vector.multi_reduction <maximumf>, %34, %cst_15 [1] : vector<2x16x128xf32> to vector<2x128xf32>
    %37 = vector.shape_cast %36 : vector<2x128xf32> to vector<2x1x128xf32>
    %38 = vector.broadcast %37 : vector<2x1x128xf32> to vector<2x16x128xf32>
    %39 = arith.subf %34, %38 : vector<2x16x128xf32>
    %40 = math.exp %39 : vector<2x16x128xf32>
    %cst_16 = arith.constant dense<0.000000e+00> : vector<2x128xf32>
    %41 = vector.multi_reduction <add>, %40, %cst_16 [1] : vector<2x16x128xf32> to vector<2x128xf32>
    %42 = vector.shape_cast %41 : vector<2x128xf32> to vector<2x1x128xf32>
    %43 = tpu.reciprocal %42 {approx = true} : vector<2x1x128xf32> -> vector<2x1x128xf32>
    %44 = vector.broadcast %43 : vector<2x1x128xf32> to vector<2x16x128xf32>
    %45 = arith.mulf %40, %44 : vector<2x16x128xf32>
    %46 = vector.shape_cast %45 : vector<2x16x128xf32> to vector<32x128xf32>
    %47 = arith.truncf %46 : vector<32x128xf32> to vector<32x128xbf16>
    %c0_17 = arith.constant 0 : index
    %c0_18 = arith.constant 0 : index
    %48 = vector.load %arg7[%c0_17, %c0_18] : memref<128x32xbf16, #tpu.memory_space<vmem>>, vector<128x32xbf16>
    %cst_19 = arith.constant dense<0.000000e+00> : vector<32x32xf32>
    %49 = tpu.matmul %47, %48, %cst_19 {dimension_numbers = #tpu.dot_dimension_numbers<[1], [0], [0], [1], [0, 0, 1, 1], [], []>} : vector<32x128xbf16>, vector<128x32xbf16>, vector<32x32xf32> -> vector<32x32xf32>
    %50 = vector.shape_cast %49 : vector<32x32xf32> to vector<2x16x1x32xf32>
    %51 = vector.shape_cast %35 : vector<32x32xf32> to vector<2x16x1x32xf32>
    %52 = arith.mulf %50, %51 : vector<2x16x1x32xf32>
    %cst_20 = arith.constant dense<0.000000e+00> : vector<2x1x32xf32>
    %53 = vector.multi_reduction <add>, %52, %cst_20 [1] : vector<2x16x1x32xf32> to vector<2x1x32xf32>
    %54 = vector.shape_cast %53 : vector<2x1x32xf32> to vector<2x32xf32>
    %55 = arith.truncf %54 : vector<2x32xf32> to vector<2x32xbf16>
    %c0_21 = arith.constant 0 : index
    %c0_22 = arith.constant 0 : index
    %56 = vector.load %arg8[%c0_21, %c0_22] : memref<32x32xbf16, #tpu.memory_space<vmem>>, vector<32x32xbf16>
    %cst_23 = arith.constant dense<0.000000e+00> : vector<2x32xf32>
    %57 = tpu.matmul %55, %56, %cst_23 {dimension_numbers = #tpu.dot_dimension_numbers<[1], [0], [0], [1], [0, 0, 1, 1], [], []>} : vector<2x32xbf16>, vector<32x32xbf16>, vector<2x32xf32> -> vector<2x32xf32>
    %c0_24 = arith.constant 0 : index
    %c0_25 = arith.constant 0 : index
    %58 = vector.load %arg9[%c0_24, %c0_25] : memref<1x32xf32, #tpu.memory_space<vmem>>, vector<1x32xf32>
    %59 = vector.broadcast %58 : vector<1x32xf32> to vector<2x32xf32>
    %60 = arith.addf %57, %59 : vector<2x32xf32>
    %c0_26 = arith.constant 0 : index
    %c0_27 = arith.constant 0 : index
    %61 = vector.load %arg2[%c0_26, %c0_27] : memref<1x32xf32, #tpu.memory_space<vmem>>, vector<1x32xf32>
    %62 = vector.shape_cast %61 : vector<1x32xf32> to vector<1x1x32xf32>
    %63 = vector.shape_cast %60 : vector<2x32xf32> to vector<2x1x32xf32>
    %64 = vector.broadcast %62 : vector<1x1x32xf32> to vector<2x1x32xf32>
    %65 = arith.addf %64, %63 : vector<2x1x32xf32>
    %66 = vector.shape_cast %65 : vector<2x1x32xf32> to vector<2x32xf32>
    %cst_28 = arith.constant dense<0.000000e+00> : vector<2xf32>
    %67 = vector.multi_reduction <add>, %66, %cst_28 [1] : vector<2x32xf32> to vector<2xf32>
    %68 = vector.shape_cast %67 : vector<2xf32> to vector<2x1xf32>
    %cst_29 = arith.constant 3.200000e+01 : f32
    %69 = vector.broadcast %cst_29 : f32 to vector<2x1xf32>
    %70 = arith.divf %68, %69 : vector<2x1xf32>
    %71 = vector.broadcast %70 : vector<2x1xf32> to vector<2x32xf32>
    %72 = arith.subf %66, %71 : vector<2x32xf32>
    %73 = arith.mulf %72, %72 : vector<2x32xf32>
    %cst_30 = arith.constant dense<0.000000e+00> : vector<2xf32>
    %74 = vector.multi_reduction <add>, %73, %cst_30 [1] : vector<2x32xf32> to vector<2xf32>
    %75 = vector.shape_cast %74 : vector<2xf32> to vector<2x1xf32>
    %cst_31 = arith.constant 3.200000e+01 : f32
    %76 = vector.broadcast %cst_31 : f32 to vector<2x1xf32>
    %77 = arith.divf %75, %76 : vector<2x1xf32>
    %cst_32 = arith.constant 9.99999974E-6 : f32
    %78 = vector.broadcast %cst_32 : f32 to vector<2x1xf32>
    %79 = arith.addf %77, %78 : vector<2x1xf32>
    %80 = math.rsqrt %79 : vector<2x1xf32>
    %81 = vector.broadcast %80 : vector<2x1xf32> to vector<2x32xf32>
    %82 = arith.mulf %72, %81 : vector<2x32xf32>
    %c0_33 = arith.constant 0 : index
    %c0_34 = arith.constant 0 : index
    %83 = vector.load %arg10[%c0_33, %c0_34] : memref<1x32xf32, #tpu.memory_space<vmem>>, vector<1x32xf32>
    %84 = vector.broadcast %83 : vector<1x32xf32> to vector<2x32xf32>
    %85 = arith.mulf %82, %84 : vector<2x32xf32>
    %c0_35 = arith.constant 0 : index
    %c0_36 = arith.constant 0 : index
    %86 = vector.load %arg11[%c0_35, %c0_36] : memref<1x32xf32, #tpu.memory_space<vmem>>, vector<1x32xf32>
    %87 = vector.broadcast %86 : vector<1x32xf32> to vector<2x32xf32>
    %88 = arith.addf %85, %87 : vector<2x32xf32>
    %89 = arith.truncf %88 : vector<2x32xf32> to vector<2x32xbf16>
    %c0_37 = arith.constant 0 : index
    %c0_38 = arith.constant 0 : index
    %90 = vector.load %arg12[%c0_37, %c0_38] : memref<32x128xbf16, #tpu.memory_space<vmem>>, vector<32x128xbf16>
    %cst_39 = arith.constant dense<0.000000e+00> : vector<2x128xf32>
    %91 = tpu.matmul %89, %90, %cst_39 {dimension_numbers = #tpu.dot_dimension_numbers<[1], [0], [0], [1], [0, 0, 1, 1], [], []>} : vector<2x32xbf16>, vector<32x128xbf16>, vector<2x128xf32> -> vector<2x128xf32>
    %c0_40 = arith.constant 0 : index
    %c0_41 = arith.constant 0 : index
    %92 = vector.load %arg13[%c0_40, %c0_41] : memref<1x128xf32, #tpu.memory_space<vmem>>, vector<1x128xf32>
    %93 = vector.broadcast %92 : vector<1x128xf32> to vector<2x128xf32>
    %94 = arith.addf %91, %93 : vector<2x128xf32>
    %cst_42 = arith.constant 5.000000e-01 : f32
    %95 = vector.broadcast %cst_42 : f32 to vector<2x128xf32>
    %96 = arith.mulf %95, %94 : vector<2x128xf32>
    %cst_43 = arith.constant 0.707106769 : f32
    %97 = vector.broadcast %cst_43 : f32 to vector<2x128xf32>
    %98 = arith.mulf %94, %97 : vector<2x128xf32>
    %99 = math.erf %98 : vector<2x128xf32>
    %cst_44 = arith.constant 1.000000e+00 : f32
    %100 = vector.broadcast %cst_44 : f32 to vector<2x128xf32>
    %101 = arith.addf %100, %99 : vector<2x128xf32>
    %102 = arith.mulf %96, %101 : vector<2x128xf32>
    %103 = arith.truncf %102 : vector<2x128xf32> to vector<2x128xbf16>
    %c0_45 = arith.constant 0 : index
    %c0_46 = arith.constant 0 : index
    %104 = vector.load %arg14[%c0_45, %c0_46] : memref<128x32xbf16, #tpu.memory_space<vmem>>, vector<128x32xbf16>
    %cst_47 = arith.constant dense<0.000000e+00> : vector<2x32xf32>
    %105 = tpu.matmul %103, %104, %cst_47 {dimension_numbers = #tpu.dot_dimension_numbers<[1], [0], [0], [1], [0, 0, 1, 1], [], []>} : vector<2x128xbf16>, vector<128x32xbf16>, vector<2x32xf32> -> vector<2x32xf32>
    %c0_48 = arith.constant 0 : index
    %c0_49 = arith.constant 0 : index
    %106 = vector.load %arg15[%c0_48, %c0_49] : memref<1x32xf32, #tpu.memory_space<vmem>>, vector<1x32xf32>
    %107 = vector.broadcast %106 : vector<1x32xf32> to vector<2x32xf32>
    %108 = arith.addf %105, %107 : vector<2x32xf32>
    %109 = vector.shape_cast %108 : vector<2x32xf32> to vector<2x1x32xf32>
    %110 = arith.addf %65, %109 : vector<2x1x32xf32>
    %c0_50 = arith.constant 0 : index
    %c0_51 = arith.constant 0 : index
    %c0_52 = arith.constant 0 : index
    %111 = vector.load %arg16[%c0_50, %c0_51, %c0_52] : memref<2x1x32xf32, #tpu.memory_space<vmem>>, vector<2x1x32xf32>
    tpu.vector_store %arg16[%c0_50, %c0_51, %c0_52], %110 {strides = array<i32>} : memref<2x1x32xf32, #tpu.memory_space<vmem>>, vector<2x1x32xf32>,
    return
  }
  func.func @transform_0(%arg0: i32) -> (i32, i32, i32) {
    %c0_i32 = arith.constant 0 : i32
    %c0_i32_0 = arith.constant 0 : i32
    %c0_i32_1 = arith.constant 0 : i32
    return %arg0, %c0_i32, %c0_i32_0 : i32, i32, i32
  }
  func.func @transform_1(%arg0: i32) -> (i32, i32) {
    %c0_i32 = arith.constant 0 : i32
    %c0_i32_0 = arith.constant 0 : i32
    %c0_i32_1 = arith.constant 0 : i32
    return %c0_i32, %c0_i32_0 : i32, i32
  }
  func.func @transform_2(%arg0: i32) -> (i32, i32) {
    %c0_i32 = arith.constant 0 : i32
    %c0_i32_0 = arith.constant 0 : i32
    %c0_i32_1 = arith.constant 0 : i32
    return %c0_i32, %c0_i32_0 : i32, i32
  }
  func.func @transform_3(%arg0: i32) -> (i32, i32) {
    %c0_i32 = arith.constant 0 : i32
    %c0_i32_0 = arith.constant 0 : i32
    %c0_i32_1 = arith.constant 0 : i32
    return %c0_i32, %c0_i32_0 : i32, i32
  }
  func.func @transform_4(%arg0: i32) -> (i32, i32) {
    %c0_i32 = arith.constant 0 : i32
    %c0_i32_0 = arith.constant 0 : i32
    %c0_i32_1 = arith.constant 0 : i32
    return %c0_i32, %c0_i32_0 : i32, i32
  }
  func.func @transform_5(%arg0: i32) -> (i32, i32) {
    %c0_i32 = arith.constant 0 : i32
    %c0_i32_0 = arith.constant 0 : i32
    %c0_i32_1 = arith.constant 0 : i32
    return %c0_i32, %c0_i32_0 : i32, i32
  }
  func.func @transform_6(%arg0: i32) -> (i32, i32) {
    %c0_i32 = arith.constant 0 : i32
    %c0_i32_0 = arith.constant 0 : i32
    %c0_i32_1 = arith.constant 0 : i32
    return %c0_i32, %c0_i32_0 : i32, i32
  }
  func.func @transform_7(%arg0: i32) -> (i32, i32) {
    %c0_i32 = arith.constant 0 : i32
    %c0_i32_0 = arith.constant 0 : i32
    %c0_i32_1 = arith.constant 0 : i32
    return %c0_i32, %c0_i32_0 : i32, i32
  }
  func.func @transform_8(%arg0: i32) -> (i32, i32) {
    %c0_i32 = arith.constant 0 : i32
    %c0_i32_0 = arith.constant 0 : i32
    %c0_i32_1 = arith.constant 0 : i32
    return %c0_i32, %c0_i32_0 : i32, i32
  }
  func.func @transform_9(%arg0: i32) -> (i32, i32) {
    %c0_i32 = arith.constant 0 : i32
    %c0_i32_0 = arith.constant 0 : i32
    %c0_i32_1 = arith.constant 0 : i32
    return %c0_i32, %c0_i32_0 : i32, i32
  }
  func.func @transform_10(%arg0: i32) -> (i32, i32) {
    %c0_i32 = arith.constant 0 : i32
    %c0_i32_0 = arith.constant 0 : i32
    %c0_i32_1 = arith.constant 0 : i32
    return %c0_i32, %c0_i32_0 : i32, i32
  }
  func.func @transform_11(%arg0: i32) -> (i32, i32) {
    %c0_i32 = arith.constant 0 : i32
    %c0_i32_0 = arith.constant 0 : i32
    %c0_i32_1 = arith.constant 0 : i32
    return %c0_i32, %c0_i32_0 : i32, i32
  }
  func.func @transform_12(%arg0: i32) -> (i32, i32) {
    %c0_i32 = arith.constant 0 : i32
    %c0_i32_0 = arith.constant 0 : i32
    %c0_i32_1 = arith.constant 0 : i32
    return %c0_i32, %c0_i32_0 : i32, i32
  }
  func.func @transform_13(%arg0: i32) -> (i32, i32) {
    %c0_i32 = arith.constant 0 : i32
    %c0_i32_0 = arith.constant 0 : i32
    %c0_i32_1 = arith.constant 0 : i32
    return %c0_i32, %c0_i32_0 : i32, i32
  }
  func.func @transform_14(%arg0: i32) -> (i32, i32) {
    %c0_i32 = arith.constant 0 : i32
    %c0_i32_0 = arith.constant 0 : i32
    %c0_i32_1 = arith.constant 0 : i32
    return %c0_i32, %c0_i32_0 : i32, i32
  }
  func.func @transform_15(%arg0: i32) -> (i32, i32, i32) {
    %c0_i32 = arith.constant 0 : i32
    %c0_i32_0 = arith.constant 0 : i32
    %c0_i32_1 = arith.constant 0 : i32
    return %arg0, %c0_i32, %c0_i32_0 : i32, i32, i32
  }
}

module attributes {stable_mosaic.version = 11 : i64} {
  func.func @attentive_pooler_kernel(%arg0: i32, %arg1: memref<2x16x32xbf16, #tpu.memory_space<vmem>>, %arg2: memref<1x32xf32, #tpu.memory_space<vmem>>, %arg3: memref<1x32xf32, #tpu.memory_space<vmem>>, %arg4: memref<1x32xf32, #tpu.memory_space<vmem>>, %arg5: memref<32x160xbf16, #tpu.memory_space<vmem>>, %arg6: memref<1x160xf32, #tpu.memory_space<vmem>>, %arg7: memref<128x32xbf16, #tpu.memory_space<vmem>>, %arg8: memref<32x32xbf16, #tpu.memory_space<vmem>>, %arg9: memref<1x32xf32, #tpu.memory_space<vmem>>, %arg10: memref<1x32xf32, #tpu.memory_space<vmem>>, %arg11: memref<1x32xf32, #tpu.memory_space<vmem>>, %arg12: memref<32x128xbf16, #tpu.memory_space<vmem>>, %arg13: memref<1x128xf32, #tpu.memory_space<vmem>>, %arg14: memref<128x32xbf16, #tpu.memory_space<vmem>>, %arg15: memref<1x32xf32, #tpu.memory_space<vmem>>, %arg16: memref<2x1x32xf32, #tpu.memory_space<vmem>>) attributes {dimension_semantics = [#tpu.dimension_semantics<parallel>], iteration_bounds = array<i64: 2>, scalar_prefetch = 0 : i64, scratch_operands = 0 : i64, tpu.core_type = #tpu.core_type<tc>, window_params = [{transform_indices = @transform_0, window_bounds = array<i64: 2, 16, 32>}, {pipeline_mode = #tpu.pipeline_mode<synchronous>, transform_indices = @transform_1, window_bounds = array<i64: 1, 32>}, {pipeline_mode = #tpu.pipeline_mode<synchronous>, transform_indices = @transform_2, window_bounds = array<i64: 1, 32>}, {pipeline_mode = #tpu.pipeline_mode<synchronous>, transform_indices = @transform_3, window_bounds = array<i64: 1, 32>}, {pipeline_mode = #tpu.pipeline_mode<synchronous>, transform_indices = @transform_4, window_bounds = array<i64: 32, 160>}, {pipeline_mode = #tpu.pipeline_mode<synchronous>, transform_indices = @transform_5, window_bounds = array<i64: 1, 160>}, {pipeline_mode = #tpu.pipeline_mode<synchronous>, transform_indices = @transform_6, window_bounds = array<i64: 128, 32>}, {pipeline_mode = #tpu.pipeline_mode<synchronous>, transform_indices = @transform_7, window_bounds = array<i64: 32, 32>}, {pipeline_mode = #tpu.pipeline_mode<synchronous>, transform_indices = @transform_8, window_bounds = array<i64: 1, 32>}, {pipeline_mode = #tpu.pipeline_mode<synchronous>, transform_indices = @transform_9, window_bounds = array<i64: 1, 32>}, {pipeline_mode = #tpu.pipeline_mode<synchronous>, transform_indices = @transform_10, window_bounds = array<i64: 1, 32>}, {pipeline_mode = #tpu.pipeline_mode<synchronous>, transform_indices = @transform_11, window_bounds = array<i64: 32, 128>}, {pipeline_mode = #tpu.pipeline_mode<synchronous>, transform_indices = @transform_12, window_bounds = array<i64: 1, 128>}, {pipeline_mode = #tpu.pipeline_mode<synchronous>, transform_indices = @transform_13, window_bounds = array<i64: 128, 32>}, {pipeline_mode = #tpu.pipeline_mode<synchronous>, transform_indices = @transform_14, window_bounds = array<i64: 1, 32>}, {transform_indices = @transform_15, window_bounds = array<i64: 2, 1, 32>}]} {
    %c0 = arith.constant 0 : index
    %c0_0 = arith.constant 0 : index
    %c0_1 = arith.constant 0 : index
    %0 = vector.load %arg1[%c0, %c0_0, %c0_1] : memref<2x16x32xbf16, #tpu.memory_space<vmem>>, vector<2x16x32xbf16>
    %1 = arith.extf %0 : vector<2x16x32xbf16> to vector<2x16x32xf32>
    %cst = arith.constant dense<0.000000e+00> : vector<2x16xf32>
    %2 = vector.multi_reduction <add>, %1, %cst [2] : vector<2x16x32xf32> to vector<2x16xf32>
    %3 = vector.shape_cast %2 : vector<2x16xf32> to vector<2x16x1xf32>
    %cst_2 = arith.constant 3.200000e+01 : f32
    %4 = vector.broadcast %cst_2 : f32 to vector<2x16x1xf32>
    %5 = arith.divf %3, %4 : vector<2x16x1xf32>
    %6 = vector.broadcast %5 : vector<2x16x1xf32> to vector<2x16x32xf32>
    %7 = arith.subf %1, %6 : vector<2x16x32xf32>
    %8 = arith.mulf %7, %7 : vector<2x16x32xf32>
    %cst_3 = arith.constant dense<0.000000e+00> : vector<2x16xf32>
    %9 = vector.multi_reduction <add>, %8, %cst_3 [2] : vector<2x16x32xf32> to vector<2x16xf32>
    %10 = vector.shape_cast %9 : vector<2x16xf32> to vector<2x16x1xf32>
    %cst_4 = arith.constant 3.200000e+01 : f32
    %11 = vector.broadcast %cst_4 : f32 to vector<2x16x1xf32>
    %12 = arith.divf %10, %11 : vector<2x16x1xf32>
    %cst_5 = arith.constant 9.99999974E-6 : f32
    %13 = vector.broadcast %cst_5 : f32 to vector<2x16x1xf32>
    %14 = arith.addf %12, %13 : vector<2x16x1xf32>
    %15 = math.rsqrt %14 : vector<2x16x1xf32>
    %16 = vector.broadcast %15 : vector<2x16x1xf32> to vector<2x16x32xf32>
    %17 = arith.mulf %7, %16 : vector<2x16x32xf32>
    %c0_6 = arith.constant 0 : index
    %c0_7 = arith.constant 0 : index
    %18 = vector.load %arg3[%c0_6, %c0_7] : memref<1x32xf32, #tpu.memory_space<vmem>>, vector<1x32xf32>
    %19 = vector.shape_cast %18 : vector<1x32xf32> to vector<1x1x32xf32>
    %20 = vector.broadcast %19 : vector<1x1x32xf32> to vector<2x16x32xf32>
    %21 = arith.mulf %17, %20 : vector<2x16x32xf32>
    %c0_8 = arith.constant 0 : index
    %c0_9 = arith.constant 0 : index
    %22 = vector.load %arg4[%c0_8, %c0_9] : memref<1x32xf32, #tpu.memory_space<vmem>>, vector<1x32xf32>
    %23 = vector.shape_cast %22 : vector<1x32xf32> to vector<1x1x32xf32>
    %24 = vector.broadcast %23 : vector<1x1x32xf32> to vector<2x16x32xf32>
    %25 = arith.addf %21, %24 : vector<2x16x32xf32>
    %26 = vector.shape_cast %25 : vector<2x16x32xf32> to vector<32x32xf32>
    %27 = arith.truncf %26 : vector<32x32xf32> to vector<32x32xbf16>
    %c0_10 = arith.constant 0 : index
    %c0_11 = arith.constant 0 : index
    %28 = vector.load %arg5[%c0_10, %c0_11] : memref<32x160xbf16, #tpu.memory_space<vmem>>, vector<32x160xbf16>
    %cst_12 = arith.constant dense<0.000000e+00> : vector<32x160xf32>
    %29 = tpu.matmul %27, %28, %cst_12 {dimension_numbers = #tpu.dot_dimension_numbers<[1], [0], [0], [1], [0, 0, 1, 1], [], []>} : vector<32x32xbf16>, vector<32x160xbf16>, vector<32x160xf32> -> vector<32x160xf32>
    %c0_13 = arith.constant 0 : index
    %c0_14 = arith.constant 0 : index
    %30 = vector.load %arg6[%c0_13, %c0_14] : memref<1x160xf32, #tpu.memory_space<vmem>>, vector<1x160xf32>
    %31 = vector.broadcast %30 : vector<1x160xf32> to vector<32x160xf32>
    %32 = arith.addf %29, %31 : vector<32x160xf32>
    %33 = vector.extract_strided_slice %32 {offsets = [0, 0], sizes = [32, 128], strides = [1, 1]} : vector<32x160xf32> to vector<32x128xf32>
    %34 = vector.shape_cast %33 : vector<32x128xf32> to vector<2x16x128xf32>
    %35 = vector.extract_strided_slice %32 {offsets = [0, 128], sizes = [32, 32], strides = [1, 1]} : vector<32x160xf32> to vector<32x32xf32>
    %cst_15 = arith.constant dense<0xFF800000> : vector<2x128xf32>
    %36 = vector.multi_reduction <maximumf>, %34, %cst_15 [1] : vector<2x16x128xf32> to vector<2x128xf32>
    %37 = vector.shape_cast %36 : vector<2x128xf32> to vector<2x1x128xf32>
    %38 = vector.broadcast %37 : vector<2x1x128xf32> to vector<2x16x128xf32>
    %39 = arith.subf %34, %38 : vector<2x16x128xf32>
    %40 = math.exp %39 : vector<2x16x128xf32>
    %cst_16 = arith.constant dense<0.000000e+00> : vector<2x128xf32>
    %41 = vector.multi_reduction <add>, %40, %cst_16 [1] : vector<2x16x128xf32> to vector<2x128xf32>
    %42 = vector.shape_cast %41 : vector<2x128xf32> to vector<2x1x128xf32>
    %43 = tpu.reciprocal %42 {approx = true} : vector<2x1x128xf32> -> vector<2x1x128xf32>
    %44 = vector.broadcast %43 : vector<2x1x128xf32> to vector<2x16x128xf32>
    %45 = arith.mulf %40, %44 : vector<2x16x128xf32>
    %46 = vector.shape_cast %45 : vector<2x16x128xf32> to vector<32x128xf32>
    %47 = arith.truncf %46 : vector<32x128xf32> to vector<32x128xbf16>
    %c0_17 = arith.constant 0 : index
    %c0_18 = arith.constant 0 : index
    %48 = vector.load %arg7[%c0_17, %c0_18] : memref<128x32xbf16, #tpu.memory_space<vmem>>, vector<128x32xbf16>
    %cst_19 = arith.constant dense<0.000000e+00> : vector<32x32xf32>
    %49 = tpu.matmul %47, %48, %cst_19 {dimension_numbers = #tpu.dot_dimension_numbers<[1], [0], [0], [1], [0, 0, 1, 1], [], []>} : vector<32x128xbf16>, vector<128x32xbf16>, vector<32x32xf32> -> vector<32x32xf32>
    %50 = vector.shape_cast %49 : vector<32x32xf32> to vector<2x16x1x32xf32>
    %51 = vector.shape_cast %35 : vector<32x32xf32> to vector<2x16x1x32xf32>
    %52 = arith.mulf %50, %51 : vector<2x16x1x32xf32>
    %cst_20 = arith.constant dense<0.000000e+00> : vector<2x1x32xf32>
    %53 = vector.multi_reduction <add>, %52, %cst_20 [1] : vector<2x16x1x32xf32> to vector<2x1x32xf32>
    %54 = vector.shape_cast %53 : vector<2x1x32xf32> to vector<2x32xf32>
    %55 = arith.truncf %54 : vector<2x32xf32> to vector<2x32xbf16>
    %c0_21 = arith.constant 0 : index
    %c0_22 = arith.constant 0 : index
    %56 = vector.load %arg8[%c0_21, %c0_22] : memref<32x32xbf16, #tpu.memory_space<vmem>>, vector<32x32xbf16>
    %cst_23 = arith.constant dense<0.000000e+00> : vector<2x32xf32>
    %57 = tpu.matmul %55, %56, %cst_23 {dimension_numbers = #tpu.dot_dimension_numbers<[1], [0], [0], [1], [0, 0, 1, 1], [], []>} : vector<2x32xbf16>, vector<32x32xbf16>, vector<2x32xf32> -> vector<2x32xf32>
    %c0_24 = arith.constant 0 : index
    %c0_25 = arith.constant 0 : index
    %58 = vector.load %arg9[%c0_24, %c0_25] : memref<1x32xf32, #tpu.memory_space<vmem>>, vector<1x32xf32>
    %59 = vector.broadcast %58 : vector<1x32xf32> to vector<2x32xf32>
    %60 = arith.addf %57, %59 : vector<2x32xf32>
    %c0_26 = arith.constant 0 : index
    %c0_27 = arith.constant 0 : index
    %61 = vector.load %arg2[%c0_26, %c0_27] : memref<1x32xf32, #tpu.memory_space<vmem>>, vector<1x32xf32>
    %62 = vector.shape_cast %61 : vector<1x32xf32> to vector<1x1x32xf32>
    %63 = vector.shape_cast %60 : vector<2x32xf32> to vector<2x1x32xf32>
    %64 = vector.broadcast %62 : vector<1x1x32xf32> to vector<2x1x32xf32>
    %65 = arith.addf %64, %63 : vector<2x1x32xf32>
    %66 = vector.shape_cast %65 : vector<2x1x32xf32> to vector<2x32xf32>
    %cst_28 = arith.constant dense<0.000000e+00> : vector<2xf32>
    %67 = vector.multi_reduction <add>, %66, %cst_28 [1] : vector<2x32xf32> to vector<2xf32>
    %68 = vector.shape_cast %67 : vector<2xf32> to vector<2x1xf32>
    %cst_29 = arith.constant 3.200000e+01 : f32
    %69 = vector.broadcast %cst_29 : f32 to vector<2x1xf32>
    %70 = arith.divf %68, %69 : vector<2x1xf32>
    %71 = vector.broadcast %70 : vector<2x1xf32> to vector<2x32xf32>
    %72 = arith.subf %66, %71 : vector<2x32xf32>
    %73 = arith.mulf %72, %72 : vector<2x32xf32>
    %cst_30 = arith.constant dense<0.000000e+00> : vector<2xf32>
    %74 = vector.multi_reduction <add>, %73, %cst_30 [1] : vector<2x32xf32> to vector<2xf32>
    %75 = vector.shape_cast %74 : vector<2xf32> to vector<2x1xf32>
    %cst_31 = arith.constant 3.200000e+01 : f32
    %76 = vector.broadcast %cst_31 : f32 to vector<2x1xf32>
    %77 = arith.divf %75, %76 : vector<2x1xf32>
    %cst_32 = arith.constant 9.99999974E-6 : f32
    %78 = vector.broadcast %cst_32 : f32 to vector<2x1xf32>
    %79 = arith.addf %77, %78 : vector<2x1xf32>
    %80 = math.rsqrt %79 : vector<2x1xf32>
    %81 = vector.broadcast %80 : vector<2x1xf32> to vector<2x32xf32>
    %82 = arith.mulf %72, %81 : vector<2x32xf32>
    %c0_33 = arith.constant 0 : index
    %c0_34 = arith.constant 0 : index
    %83 = vector.load %arg10[%c0_33, %c0_34] : memref<1x32xf32, #tpu.memory_space<vmem>>, vector<1x32xf32>
    %84 = vector.broadcast %83 : vector<1x32xf32> to vector<2x32xf32>
    %85 = arith.mulf %82, %84 : vector<2x32xf32>
    %c0_35 = arith.constant 0 : index
    %c0_36 = arith.constant 0 : index
    %86 = vector.load %arg11[%c0_35, %c0_36] : memref<1x32xf32, #tpu.memory_space<vmem>>, vector<1x32xf32>
    %87 = vector.broadcast %86 : vector<1x32xf32> to vector<2x32xf32>
    %88 = arith.addf %85, %87 : vector<2x32xf32>
    %89 = arith.truncf %88 : vector<2x32xf32> to vector<2x32xbf16>
    %c0_37 = arith.constant 0 : index
    %c0_38 = arith.constant 0 : index
    %90 = vector.load %arg12[%c0_37, %c0_38] : memref<32x128xbf16, #tpu.memory_space<vmem>>, vector<32x128xbf16>
    %cst_39 = arith.constant dense<0.000000e+00> : vector<2x128xf32>
    %91 = tpu.matmul %89, %90, %cst_39 {dimension_numbers = #tpu.dot_dimension_numbers<[1], [0], [0], [1], [0, 0, 1, 1], [], []>} : vector<2x32xbf16>, vector<32x128xbf16>, vector<2x128xf32> -> vector<2x128xf32>
    %c0_40 = arith.constant 0 : index
    %c0_41 = arith.constant 0 : index
    %92 = vector.load %arg13[%c0_40, %c0_41] : memref<1x128xf32, #tpu.memory_space<vmem>>, vector<1x128xf32>
    %93 = vector.broadcast %92 : vector<1x128xf32> to vector<2x128xf32>
    %94 = arith.addf %91, %93 : vector<2x128xf32>
    %cst_42 = arith.constant 5.000000e-01 : f32
    %95 = vector.broadcast %cst_42 : f32 to vector<2x128xf32>
    %96 = arith.mulf %95, %94 : vector<2x128xf32>
    %cst_43 = arith.constant 0.707106769 : f32
    %97 = vector.broadcast %cst_43 : f32 to vector<2x128xf32>
    %98 = arith.mulf %94, %97 : vector<2x128xf32>
    %99 = math.erf %98 : vector<2x128xf32>
    %cst_44 = arith.constant 1.000000e+00 : f32
    %100 = vector.broadcast %cst_44 : f32 to vector<2x128xf32>
    %101 = arith.addf %100, %99 : vector<2x128xf32>
    %102 = arith.mulf %96, %101 : vector<2x128xf32>
    %103 = arith.truncf %102 : vector<2x128xf32> to vector<2x128xbf16>
    %c0_45 = arith.constant 0 : index
    %c0_46 = arith.constant 0 : index
    %104 = vector.load %arg14[%c0_45, %c0_46] : memref<128x32xbf16, #tpu.memory_space<vmem>>, vector<128x32xbf16>
    %cst_47 = arith.constant dense<0.000000e+00> : vector<2x32xf32>
    %105 = tpu.matmul %103, %104, %cst_47 {dimension_numbers = #tpu.dot_dimension_numbers<[1], [0], [0], [1], [0, 0, 1, 1], [], []>} : vector<2x128xbf16>, vector<128x32xbf16>, vector<2x32xf32> -> vector<2x32xf32>
    %c0_48 = arith.constant 0 : index
    %c0_49 = arith.constant 0 : index
    %106 = vector.load %arg15[%c0_48, %c0_49] : memref<1x32xf32, #tpu.memory_space<vmem>>, vector<1x32xf32>
    %107 = vector.broadcast %106 : vector<1x32xf32> to vector<2x32xf32>
    %108 = arith.addf %105, %107 : vector<2x32xf32>
    %109 = vector.shape_cast %108 : vector<2x32xf32> to vector<2x1x32xf32>
    %110 = arith.addf %65, %109 : vector<2x1x32xf32>
    %c0_50 = arith.constant 0 : index
    %c0_51 = arith.constant 0 : index
    %c0_52 = arith.constant 0 : index
    %111 = vector.load %arg16[%c0_50, %c0_51, %c0_52] : memref<2x1x32xf32, #tpu.memory_space<vmem>>, vector<2x1x32xf32>
    tpu.vector_store %arg16[%c0_50, %c0_51, %c0_52], %110 {strides = array<i32>} : memref<2x1x32xf32, #tpu.memory_space<vmem>>, vector<2x1x32xf32>,
    return
  }
  func.func @transform_0(%arg0: i32) -> (i32, i32, i32) {
    %c0_i32 = arith.constant 0 : i32
    %c0_i32_0 = arith.constant 0 : i32
    %c0_i32_1 = arith.constant 0 : i32
    return %arg0, %c0_i32, %c0_i32_0 : i32, i32, i32
  }
  func.func @transform_1(%arg0: i32) -> (i32, i32) {
    %c0_i32 = arith.constant 0 : i32
    %c0_i32_0 = arith.constant 0 : i32
    %c0_i32_1 = arith.constant 0 : i32
    return %c0_i32, %c0_i32_0 : i32, i32
  }
  func.func @transform_2(%arg0: i32) -> (i32, i32) {
    %c0_i32 = arith.constant 0 : i32
    %c0_i32_0 = arith.constant 0 : i32
    %c0_i32_1 = arith.constant 0 : i32
    return %c0_i32, %c0_i32_0 : i32, i32
  }
  func.func @transform_3(%arg0: i32) -> (i32, i32) {
    %c0_i32 = arith.constant 0 : i32
    %c0_i32_0 = arith.constant 0 : i32
    %c0_i32_1 = arith.constant 0 : i32
    return %c0_i32, %c0_i32_0 : i32, i32
  }
  func.func @transform_4(%arg0: i32) -> (i32, i32) {
    %c0_i32 = arith.constant 0 : i32
    %c0_i32_0 = arith.constant 0 : i32
    %c0_i32_1 = arith.constant 0 : i32
    return %c0_i32, %c0_i32_0 : i32, i32
  }
  func.func @transform_5(%arg0: i32) -> (i32, i32) {
    %c0_i32 = arith.constant 0 : i32
    %c0_i32_0 = arith.constant 0 : i32
    %c0_i32_1 = arith.constant 0 : i32
    return %c0_i32, %c0_i32_0 : i32, i32
  }
  func.func @transform_6(%arg0: i32) -> (i32, i32) {
    %c0_i32 = arith.constant 0 : i32
    %c0_i32_0 = arith.constant 0 : i32
    %c0_i32_1 = arith.constant 0 : i32
    return %c0_i32, %c0_i32_0 : i32, i32
  }
  func.func @transform_7(%arg0: i32) -> (i32, i32) {
    %c0_i32 = arith.constant 0 : i32
    %c0_i32_0 = arith.constant 0 : i32
    %c0_i32_1 = arith.constant 0 : i32
    return %c0_i32, %c0_i32_0 : i32, i32
  }
  func.func @transform_8(%arg0: i32) -> (i32, i32) {
    %c0_i32 = arith.constant 0 : i32
    %c0_i32_0 = arith.constant 0 : i32
    %c0_i32_1 = arith.constant 0 : i32
    return %c0_i32, %c0_i32_0 : i32, i32
  }
  func.func @transform_9(%arg0: i32) -> (i32, i32) {
    %c0_i32 = arith.constant 0 : i32
    %c0_i32_0 = arith.constant 0 : i32
    %c0_i32_1 = arith.constant 0 : i32
    return %c0_i32, %c0_i32_0 : i32, i32
  }
  func.func @transform_10(%arg0: i32) -> (i32, i32) {
    %c0_i32 = arith.constant 0 : i32
    %c0_i32_0 = arith.constant 0 : i32
    %c0_i32_1 = arith.constant 0 : i32
    return %c0_i32, %c0_i32_0 : i32, i32
  }
  func.func @transform_11(%arg0: i32) -> (i32, i32) {
    %c0_i32 = arith.constant 0 : i32
    %c0_i32_0 = arith.constant 0 : i32
    %c0_i32_1 = arith.constant 0 : i32
    return %c0_i32, %c0_i32_0 : i32, i32
  }
  func.func @transform_12(%arg0: i32) -> (i32, i32) {
    %c0_i32 = arith.constant 0 : i32
    %c0_i32_0 = arith.constant 0 : i32
    %c0_i32_1 = arith.constant 0 : i32
    return %c0_i32, %c0_i32_0 : i32, i32
  }
  func.func @transform_13(%arg0: i32) -> (i32, i32) {
    %c0_i32 = arith.constant 0 : i32
    %c0_i32_0 = arith.constant 0 : i32
    %c0_i32_1 = arith.constant 0 : i32
    return %c0_i32, %c0_i32_0 : i32, i32
  }
  func.func @transform_14(%arg0: i32) -> (i32, i32) {
    %c0_i32 = arith.constant 0 : i32
    %c0_i32_0 = arith.constant 0 : i32
    %c0_i32_1 = arith.constant 0 : i32
    return %c0_i32, %c0_i32_0 : i32, i32
  }
  func.func @transform_15(%arg0: i32) -> (i32, i32, i32) {
    %c0_i32 = arith.constant 0 : i32
    %c0_i32_0 = arith.constant 0 : i32
    %c0_i32_1 = arith.constant 0 : i32
    return %arg0, %c0_i32, %c0_i32_0 : i32, i32, i32
  }
}

</mosaic_0001>

<bundles_post_ra>
// kernel: tpu_custom_call.1
= control target key start
LH: loop header
LB: loop body
LE: loop exit
PB: predicated region body
PF: predicated region fallthrough
CT: control target
= control target key end

     0   :  { %s2769_s0 = inlined_call_operand.vmem [shape: bf16[4,16,32], index: 0, kind: input, shape index: {}]   ;;  %s2770_s1 = inlined_call_operand.vmem [shape: f32[1,32], index: 1, kind: input, shape index: {}]   ;;  %s2771_s2 = inlined_call_operand.vmem [shape: f32[1,32], index: 2, kind: input, shape index: {}]   ;;  %s2772_s3 = inlined_call_operand.vmem [shape: f32[1,32], index: 3, kind: input, shape index: {}]   ;;  %s2773_s4 = inlined_call_operand.vmem [shape: bf16[32,160], index: 4, kind: input, shape index: {}]   ;;  %s2774_s5 = inlined_call_operand.vmem [shape: f32[1,160], index: 5, kind: input, shape index: {}]   ;;  %s2775_s6 = inlined_call_operand.vmem [shape: bf16[128,32], index: 6, kind: input, shape index: {}]   ;;  %s2776_s7 = inlined_call_operand.vmem [shape: bf16[32,32], index: 7, kind: input, shape index: {}]   ;;  %s2777_s8 = inlined_call_operand.vmem [shape: f32[1,32], index: 8, kind: input, shape index: {}]   ;;  %s2778_s9 = inlined_call_operand.vmem [shape: f32[1,32], index: 9, kind: input, shape index: {}]   ;;  %s2779_s10 = inlined_call_operand.vmem [shape: f32[1,32], index: 10, kind: input, shape index: {}]   ;;  %s2780_s11 = inlined_call_operand.vmem [shape: bf16[32,128], index: 11, kind: input, shape index: {}]   ;;  %s2781_s12 = inlined_call_operand.vmem [shape: f32[1,128], index: 12, kind: input, shape index: {}]   ;;  %s2782_s13 = inlined_call_operand.vmem [shape: bf16[128,32], index: 13, kind: input, shape index: {}]   ;;  %s2783_s14 = inlined_call_operand.vmem [shape: f32[1,32], index: 14, kind: input, shape index: {}]   ;;  %s2784_s15 = inlined_call_operand.hbm [shape: f32[4,1,32], index: 15, kind: output, shape index: {}]  }
   0x1   :  { %2785 = sst [smem:[#allocation6_spill]] %s2769_s0 }
   0x2   :  { %2786 = sst [smem:[#allocation7_spill]] %s2770_s1 }
   0x3   :  { %2787 = sst [smem:[#allocation8_spill]] %s2771_s2 }
   0x4   :  { %2788 = sst [smem:[#allocation9_spill]] %s2772_s3 }
   0x5   :  { %20 = vsyncpa [#allocation3], 0 }
   0x6   :  { %22 = vsyncpa [#allocation3 + $0x1], 0  ;;  %s2325_s18 = smov 0   ;;  %s2327_s19 = smov 0  }
   0x7   :  { %s2329_s20 = smov 0   ;;  %s2331_s21 = smov 0  }
   0x8 LB: > { %s2346_s22 = sadd.s32 4294967295, %s2236_s21   ;;  %s1941_s23 = sadd.s32 4294967294, %s2236_s21   ;;  %s2236_s21 = sphi %s2331_s21, %s2800_s21   ;;  %s2232_s20 = sphi %s2329_s20, %s2799_s20   ;;  %s2228_s19 = sphi %s2327_s19, %s2798_s19   ;;  %s2224_s18 = sphi %s2325_s18, %s2797_s18  }
   0x9   : > { %s2350_s24 = sadd.s32 1, %s2236_s21   ;;  %s355_s25 = sadd.s32 1, %s2232_s20 }
   0xa   : > { %s352_s26 = ssub.s32 %s2236_s21, %s2350_s24  ;;  %p365_p0 = scmp.ne.s32.totalorder %s2232_s20, %s2228_s19 }
   0xb   : > { %p353_p1 = scmp.eq.s32.totalorder %s352_s26, 0  ;;  %p366_p2 = scmp.eq.s32.totalorder %s2346_s22, 1 }
   0xc   : > { %p371_p3 = scmp.ne.s32.totalorder %s2228_s19, %s2224_s18  ;;  %p372_p4 = scmp.eq.s32.totalorder %s1941_s23, 1 }
   0xd   : > { %s2361_s27 = scalar_select %p353_p1, %s2232_s20, %s355_s25  }
   0xe   : > { %p2363_p5 = por %p366_p2, %p365_p0  ;;  %p2367_p6 = por %p372_p4, %p371_p3 }
   0xf   : > { %2789 = sst [smem:[#allocation5_spill]] %s2361_s27  ;;  %p1944_p7 = scmp.ge.s32.totalorder %s2236_s21, 1 }
  0x10   : > { %p442_p8 = scmp.lt.s32.totalorder %s2236_s21, 3 }
  0x12   : > { %p443_p9 = pnand %p1944_p7, %p442_p8 }
  0x13   : > { %s1946_s30 = sshll.u32 (!%p443_p9), %s2346_s22, 1  ;;  %s2792_s0 = sld [smem:[#allocation6_spill]] (!%p443_p9) }
  0x14   : > { %446 = sbr.rel (%p443_p9) target bundleno = 1836 (0x72c), region = 80  ;;  %p492_p10 = scmp.lt.s32.totalorder (!%p443_p9), %s1946_s30, 3 }
  0x15   : > { %s2793_s2 = sld [smem:[#allocation8_spill]] (!%p443_p9) }
  0x16   : > { %s2794_s3 = sld [smem:[#allocation9_spill]] (!%p443_p9) }
  0x17   : > { %s2795_s1 = sld [smem:[#allocation7_spill]] (!%p443_p9) }
  0x19   : > { %s2802_s30 = smov (!%p492_p10, %s1946_s30), 3  ;;  %vm508_vm0 = vcmask 261120   ;;  %v2126_v30 = vld [vmem:[%s2773_s4 + $0x14] ss:$8 sps:$4 sm:$0xff]   ;;  %v2128_v31 = vld [vmem:[%s2773_s4 + $0x10] ss:$8 sps:$4 sm:$0xff]  }
  0x1a   : > { %s1989_s16 = sshll.u32 %s2802_s30, 3  ;;  %v2129_v32 = vld [vmem:[%s2773_s4 + $0x4] ss:$8 sps:$4 sm:$0xff]   ;;  %640 = vmatprep.subr.bf16.mxu1 %v2126_v30  ;;  %v2238_v33 = vmov 0   ;;  %v2131_v34 = vld [vmem:[%s2773_s4] ss:$8 sps:$4 sm:$0xff]  }
  0x1b   : > { %s496_s25 = scalar_lea.vmem %s2792_s0, %s1989_s16  ;;  %660 = vmatprep.mubr.bf16.mxu1 %v2238_v33  ;;  %641 = vmatpush1.bf16.msra.mxu1 %v2128_v31  ;;  %v1949_v49 = vld [vmem:[%s2793_s2] ss:$0 sm:$0xff]  ;;  %vm2240_vm1 = vmmov 0   ;;  %vm1338_vm2 = vcmask 253952   ;;  %vm1419_vm3 = vcmask 1041409   ;;  %vm1523_vm4 = vcmask 254976  }
  0x1c   : > { %v1992_v0 = vld [vmem:[%s496_s25] sm:$0xff]   ;;  %v1999_v1 = vld [vmem:[%s496_s25 + $0x8] sm:$0xff]   ;;  %642 = vmatprep.subr.bf16.mxu1 %v2129_v32  ;;  %s488_s0 = sand.u32 1, %s2228_s19   ;;  %s1990_s16 = sshll.u32 %s2346_s22, 5 }
  0x1d   : > { %v1993_v2 = vunpack.c.l.bf16 %v1992_v0  ;;  %v1997_v3 = vunpack.c.l.bf16 %v1999_v1  ;;  %v1994_v4 = vunpack.c.h.bf16 %v1992_v0  ;;  %v1998_v5 = vunpack.c.h.bf16 %v1999_v1  ;;  %v1950_v54 = vld [vmem:[%s2794_s3] ss:$0 sm:$0xff]  ;;  %s1945_s30 = sshll.u32 %s488_s0, 1  ;;  %s2722_s26 = scalar_lea.hbm %s2784_s15, %s1990_s16 }
  0x1e   : > { %s490_s17 = scalar_lea.vmem [#allocation2], %s1945_s30  ;;  %s2729_s22 = scalar_lea.sflag [#allocation3], %s488_s0 }
  0x1f   : > { %v509_v6 = vsel %vm508_vm0, %v1993_v2, 0.0  ;;  %v515_v7 = vsel %vm508_vm0, %v1997_v3, 0.0  ;;  %v512_v8 = vsel %vm508_vm0, %v1994_v4, 0.0  ;;  %v518_v9 = vsel %vm508_vm0, %v1998_v5, 0.0  ;;  %643 = vmatpush1.bf16.msra.mxu1 %v2131_v34  ;;  %s1879_s23 = sshll.u32 %s490_s17, 4  ;;  %s2242_s16 = smov [#allocation2]   ;;  %s2724_s23 = int_to_ptr.vmem [resolvable:$true] %s1879_s23 }
  0x20   : > { %510 = vadd.xlane.f32.xlu0 %v509_v6  ;;  %516 = vadd.xlane.f32.xlu1 %v515_v7  ;;  %v2135_v6 = vld [vmem:[%s2775_s6 + $0x20] sm:$0xff]   ;;  %v2136_v7 = vld [vmem:[%s2775_s6 + $0x18] sm:$0xff]   ;;  %s2176_s30 = scalar_lea.vmem %s2724_s23, 32  ;;  %s2180_s25 = sshll.u32 %s2242_s16, 4  ;;  %s2181_s25 = int_to_ptr.vmem [resolvable:$false] %s2180_s25 }
  0x21   : > { %p2177_p11 = scmp.ne.s32.totalorder %s2724_s23, %s2176_s30  ;;  %s2182_s27 = scalar_lea.vmem %s2181_s25, 64 }
  0x22   : > { %p2183_p0 = scmp.lt.s32.totalorder %s2724_s23, %s2181_s25  ;;  %p2184_p1 = scmp.lt.s32.totalorder %s2182_s27, %s2176_s30 }
  0x23   : > { %p2178_p12 = pnand %p2177_p11, %p2363_p5 }
  0x24   : > { %513 = vadd.xlane.f32.xlu0 %v512_v8  ;;  %519 = vadd.xlane.f32.xlu1 %v518_v9  ;;  %v2137_v8 = vld [vmem:[%s2775_s6 + $0x10] sm:$0xff]   ;;  %v2138_v9 = vld [vmem:[%s2775_s6 + $0x8] sm:$0xff]   ;;  %p2185_p2 = por %p2184_p1, %p2183_p0 }
  0x25   : > { %p2179_p13 = pneg %p2178_p12 }
  0x27   : > { %p2186_p3 = pnand %p2185_p2, %p2179_p13 }
  0xa9   : > { %v511_v10 = vpop.xlane.xlu0 %510  ;;  %v517_v11 = vpop.xlane.xlu1 %516 }
  0xaa   : > { %v522_v12 = vmul.f32 0.03125, %v511_v10  ;;  %v524_v13 = vmul.f32 0.03125, %v517_v11  ;;  %v2139_v10 = vld [vmem:[%s2775_s6] sm:$0xff]   ;;  %v592_v11 = vlaneseq }
  0xac   : > { %v526_v14 = vsub.f32 %v1993_v2, %v522_v12  ;;  %v528_v15 = vsub.f32 %v1997_v3, %v524_v13  ;;  %v2132_v3 = vld [vmem:[%s2775_s6 + $0x38] sm:$0xff]   ;;  %v2429_v12 = vshrl.u32 %v592_v11, 7  ;;  %v2140_v11 = vld [vmem:[%s2776_s7 + $0x8] sm:$0xff]  }
  0xad   : > { %v514_v16 = vpop.xlane.xlu0 %513  ;;  %v520_v17 = vpop.xlane.xlu1 %519  ;;  %2025 = vmatprep.subr.bf16.mxu1 %v2132_v3 }
  0xae   : > { %v523_v18 = vmul.f32 0.03125, %v514_v16  ;;  %v525_v19 = vmul.f32 0.03125, %v520_v17  ;;  %v530_v20 = vmul.f32 %v526_v14, %v526_v14  ;;  %v532_v21 = vmul.f32 %v528_v15, %v528_v15 }
  0xaf   : > { %v2432_v13 = vsub.s32 0, %v2429_v12 }
  0xb0   : > { %v527_v22 = vsub.f32 %v1994_v4, %v523_v18  ;;  %v529_v23 = vsub.f32 %v1998_v5, %v525_v19  ;;  %v534_v24 = vsel %vm508_vm0, %v530_v20, 0.0  ;;  %v540_v25 = vsel %vm508_vm0, %v532_v21, 0.0  ;;  %v2133_v4 = vld [vmem:[%s2775_s6 + $0x30] sm:$0xff]   ;;  %v2134_v5 = vld [vmem:[%s2775_s6 + $0x28] sm:$0xff]  }
  0xb1   : > { %535 = vadd.xlane.f32.xlu0 %v534_v24 }
  0xb2   : > { %v531_v26 = vmul.f32 %v527_v22, %v527_v22  ;;  %v533_v27 = vmul.f32 %v529_v23, %v529_v23 }
  0xb4   : > { %v537_v28 = vsel %vm508_vm0, %v531_v26, 0.0  ;;  %v543_v29 = vsel %vm508_vm0, %v533_v27, 0.0 }
  0xb5   : > { %541 = vadd.xlane.f32.xlu0 %v540_v25  ;;  %538 = vadd.xlane.f32.xlu1 %v537_v28 }
  0xb9   : > { %544 = vadd.xlane.f32.xlu1 %v543_v29 }
 0x13a   : > { %v536_v35 = vpop.xlane.xlu0 %535 }
 0x13b   : > { %v546_v36 = vmul.f32 0.03125, %v536_v35 }
 0x13d   : > { %v550_v37 = vadd.f32 1e-05, %v546_v36 }
 0x13e   : > { %v539_v38 = vpop.xlane.xlu1 %538  ;;  %v542_v39 = vpop.xlane.xlu0 %541 }
 0x13f   : > { %2152 = vrsqrt.f32 %v550_v37  ;;  %v547_v40 = vmul.f32 0.03125, %v539_v38  ;;  %v548_v41 = vmul.f32 0.03125, %v542_v39 }
 0x141   : > { %v551_v42 = vadd.f32 1e-05, %v547_v40  ;;  %v552_v43 = vadd.f32 1e-05, %v548_v41 }
 0x142   : > { %v545_v44 = vpop.xlane.xlu1 %544 }
 0x143   : > { %2154 = vrsqrt.f32 %v551_v42  ;;  %v549_v45 = vmul.f32 0.03125, %v545_v44 }
 0x144   : > { %2156 = vrsqrt.f32 %v552_v43 }
 0x145   : > { %v553_v46 = vadd.f32 1e-05, %v549_v45 }
 0x147   : > { %2158 = vrsqrt.f32 %v553_v46 }
 0x14c   : > { %v2153_v47 = vpop.eup %2152 }
 0x14d   : > { %v558_v48 = vmul.f32 %v2153_v47, %v526_v14  ;;  %v2437_v14 = vld [vmem:[%s2774_s5] sm:$0x3] }
 0x14e   : > { %v595_v16 = vrot.slane %v2437_v14, %v2432_v13 }
 0x14f   : > { %v569_v52 = vmul.f32 %v1949_v49, %v558_v48 }
 0x150   : > { %v2155_v50 = vpop.eup %2154 }
 0x151   : > { %v559_v51 = vmul.f32 %v2155_v50, %v527_v22  ;;  %v2157_v53 = vpop.eup %2156  ;;  %v580_v57 = vadd.f32 %v1950_v54, %v569_v52 }
 0x152   : > { %v560_v59 = vmul.f32 %v2157_v53, %v528_v15 }
 0x153   : > { %v570_v55 = vmul.f32 %v1949_v49, %v559_v51 }
 0x154   : > { %v2159_v56 = vpop.eup %2158  ;;  %v571_v63 = vmul.f32 %v1949_v49, %v560_v59 }
 0x155   : > { %v581_v58 = vadd.f32 %v1950_v54, %v570_v55  ;;  %v561_v60 = vmul.f32 %v2159_v56, %v529_v23 }
 0x156   : > { %v582_v1 = vadd.f32 %v1950_v54, %v571_v63 }
 0x157   : > { %v584_v61 = vpack.c.bf16 %v581_v58, %v580_v57  ;;  %v572_v62 = vmul.f32 %v1949_v49, %v561_v60 }
 0x159   : > { %1955 = vmatmul.mubr.msk.bf16.vlgmr.msra.gmra.mxu1 %vm508_vm0, %v584_v61  ;;  %v583_v0 = vadd.f32 %v1950_v54, %v572_v62 }
 0x15a   : > { %670 = vmatprep.mubr.bf16.mxu1 %v2238_v33  ;;  %2026 = vmatpush3.bf16.msra.mxu1 %v2132_v3 }
 0x15b   : > { %v585_v2 = vpack.c.bf16 %v583_v0, %v582_v1  ;;  %2027 = vmatprep.subr.bf16.mxu1 %v2133_v4 }
 0x15e   : > { %2028 = vmatpush3.bf16.msra.mxu1 %v2133_v4 }
 0x15f   : > { %2029 = vmatprep.subr.bf16.mxu1 %v2134_v5 }
 0x161   : > { %1956 = vmatmul.mubr.msk.bf16.gmra.mxu1 %vm508_vm0, %v585_v2 }
 0x162   : > { %2030 = vmatpush3.bf16.msra.mxu1 %v2134_v5 }
 0x163   : > { %2031 = vmatprep.subr.bf16.mxu1 %v2135_v6 }
 0x166   : > { %2032 = vmatpush3.bf16.msra.mxu1 %v2135_v6 }
 0x167   : > { %2033 = vmatprep.subr.bf16.mxu1 %v2136_v7 }
 0x16a   : > { %2034 = vmatpush3.bf16.msra.mxu1 %v2136_v7 }
 0x16b   : > { %2035 = vmatprep.subr.bf16.mxu1 %v2137_v8 }
 0x16e   : > { %2036 = vmatpush3.bf16.msra.mxu1 %v2137_v8 }
 0x16f   : > { %2037 = vmatprep.subr.bf16.mxu1 %v2138_v9 }
 0x172   : > { %2038 = vmatpush3.bf16.msra.mxu1 %v2138_v9 }
 0x173   : > { %2039 = vmatprep.subr.bf16.mxu1 %v2139_v10 }
 0x176   : > { %2040 = vmatpush3.bf16.msra.mxu1 %v2139_v10 }
 0x219   : > { %v662_v15 = vpop.f32.mrf.mxu1 }
 0x21a   : > { %v663_v19 = vadd.f32 %v662_v15, %v595_v16  ;;  %v2239_v15 = vmov 0.0  }
 0x21b   : > { %v2441_v17 = vpop.f32.mrf.mxu1  ;;  %2045 = vmatprep.subr.bf16.mxu0 %v2239_v15  ;;  %2049 = vmatprep.mubr.msk.bf16.mxu0 %vm2240_vm1, %v2239_v15 }
 0x21c   : > { %2046 = vmatpush3.bf16.msra.mxu0 %v2140_v11 }
 0x21d   : > { %v666_v18 = vpop.f32.mrf.mxu1  ;;  %2047 = vmatprep.subr.bf16.mxu0 %v2239_v15 }
 0x21e   : > { %v667_v20 = vadd.f32 %v666_v18, %v595_v16  ;;  %v2459_v18 = vsub.s32 1, %v2429_v12 }
 0x21f   : > { %v2443_v21 = vpop.f32.mrf.mxu1 }
 0x220   : > { %v681_v22 = vmax.f32 %v663_v19, %v667_v20 }
 0x221   : > { %v672_v23 = vpop.f32.mrf.mxu1 }
 0x222   : > { %v682_v24 = vrot.slane %v681_v22, 4  ;;  %v673_v31 = vadd.f32 %v672_v23, %v595_v16 }
 0x223   : > { %v2445_v25 = vpop.f32.mrf.mxu1 }
 0x224   : > { %v683_v26 = vmax.f32 %v681_v22, %v682_v24  ;;  %v599_v22 = vrot.slane %v2437_v14, %v2459_v18 }
 0x225   : > { %v676_v27 = vpop.f32.mrf.mxu1 }
 0x226   : > { %v684_v28 = vrot.slane %v683_v26, 2  ;;  %v677_v29 = vadd.f32 %v676_v27, %v595_v16  ;;  %v2141_v16 = vld [vmem:[%s2776_s7] sm:$0xff]   ;;  %v665_v24 = vadd.f32 %v2441_v17, %v599_v22 }
 0x227   : > { %2048 = vmatpush3.bf16.msra.mxu0 %v2141_v16 }
 0x228   : > { %v685_v30 = vmax.f32 %v683_v26, %v684_v28  ;;  %v688_v33 = vmax.f32 %v673_v31, %v677_v29  ;;  %2053 = vmatprep.subr.bf16.mxu0 %v2239_v15  ;;  %v1078_v27 = vcombine.high %v665_v24, %v665_v24  ;;  %v669_v28 = vadd.f32 %v2443_v21, %v599_v22 }
 0x22a   : > { %v686_v32 = vrot.slane %v685_v30, 1  ;;  %v689_v35 = vrot.slane %v688_v33, 4 }
 0x22c   : > { %v687_v34 = vmax.f32 %v685_v30, %v686_v32  ;;  %v690_v38 = vmax.f32 %v688_v33, %v689_v35  ;;  %v1127_v35 = vcombine.high %v669_v28, %v669_v28 }
 0x22e   : > { %v695_v36 = vsub.f32 %v663_v19, %v687_v34  ;;  %v696_v37 = vsub.f32 %v667_v20, %v687_v34  ;;  %v691_v41 = vrot.slane %v690_v38, 2  ;;  %v2241_v19 = vmov 1966171168  }
 0x22f   : > { %v848_v20 = vunpack.c.l.s4 %v2241_v19 }
 0x230   : > { %v699_v39 = vmul.f32 1.442695, %v695_v36  ;;  %v701_v40 = vmul.f32 1.442695, %v696_v37  ;;  %v692_v42 = vmax.f32 %v690_v38, %v691_v41 }
 0x231   : > { %v849_v23 = vunpack.c.0.s8 %v848_v20 }
 0x232   : > { %2160 = vpow2.f32 %v699_v39  ;;  %v693_v43 = vrot.slane %v692_v42, 1 }
 0x233   : > { %2162 = vpow2.f32 %v701_v40  ;;  %v2465_v26 = vsub.s32 %v849_v23, %v2429_v12  ;;  %v678_v12 = vpop.f32.mrf.mxu1 }
 0x234   : > { %v694_v44 = vmax.f32 %v692_v42, %v693_v43  ;;  %v679_v41 = vadd.f32 %v678_v12, %v599_v22 }
 0x235   : > { %v1092_v30 = vrot.slane %v1078_v27, %v2465_v26  ;;  %v1134_v32 = vrot.slane %v669_v28, %v2465_v26  ;;  %v2487_v40 = vrot.slane %v1127_v35, %v2465_v26 }
 0x236   : > { %v697_v45 = vsub.f32 %v673_v31, %v694_v44  ;;  %v698_v46 = vsub.f32 %v677_v29, %v694_v44  ;;  %v1085_v29 = vrot.slane %v665_v24, %v2465_v26  ;;  %v675_v31 = vadd.f32 %v2445_v25, %v599_v22 }
 0x237   : > { %v1094_v34 = vcombine.high %v1092_v30, %v1092_v30  ;;  %v1142_v36 = vcombine.high %v1134_v32, %v1134_v32  ;;  %v2477_v21 = vrot.slane %v1092_v30, %v2465_v26  ;;  %v2490_v42 = vrot.slane %v1134_v32, %v2465_v26 }
 0x238   : > { %v703_v47 = vmul.f32 1.442695, %v697_v45  ;;  %v705_v48 = vmul.f32 1.442695, %v698_v46  ;;  %v1093_v33 = vcombine.high %v1085_v29, %v1085_v29  ;;  %v1176_v14 = vcombine.high %v675_v31, %v675_v31 }
 0x239   : > { %v1183_v17 = vrot.slane %v675_v31, %v2465_v26  ;;  %v2474_v37 = vrot.slane %v1085_v29, %v2465_v26  ;;  %v2483_v25 = vrot.slane %v1094_v34, %v2465_v26  ;;  %v2493_v43 = vrot.slane %v1142_v36, %v2465_v26 }
 0x23a   : > { %2164 = vpow2.f32 %v703_v47  ;;  %v2480_v38 = vrot.slane %v1093_v33, %v2465_v26  ;;  %v1190_v39 = vrot.slane %v1176_v14, %v2465_v26  ;;  %v1124_v46 = vcombine.high %v2477_v21, %v2477_v21 }
 0x23b   : > { %2166 = vpow2.f32 %v705_v48  ;;  %v1191_v44 = vcombine.high %v1183_v17, %v1183_v17  ;;  %v1123_v45 = vcombine.high %v2474_v37, %v2474_v37  ;;  %v1126_v48 = vcombine.high %v2483_v25, %v2483_v25 }
 0x23c   : > { %v1125_v47 = vcombine.high %v2480_v38, %v2480_v38 }
 0x23f   : > { %v2161_v49 = vpop.eup %2160 }
 0x240   : > { %v2163_v50 = vpop.eup %2162 }
 0x241   : > { %v707_v51 = vadd.f32 %v2163_v50, %v2161_v49 }
 0x243   : > { %v708_v52 = vrot.slane %v707_v51, 4 }
 0x245   : > { %v709_v53 = vadd.f32 %v708_v52, %v707_v51  ;;  %v1143_v52 = vcombine.high %v2487_v40, %v2487_v40 }
 0x247   : > { %v710_v54 = vrot.slane %v709_v53, 2  ;;  %v2165_v55 = vpop.eup %2164 }
 0x248   : > { %v2167_v57 = vpop.eup %2166 }
 0x249   : > { %v711_v56 = vadd.f32 %v710_v54, %v709_v53  ;;  %v714_v58 = vadd.f32 %v2167_v57, %v2165_v55  ;;  %v1225_v53 = vcombine.high %v679_v41, %v679_v41 }
 0x24b   : > { %v712_v59 = vrot.slane %v711_v56, 1  ;;  %v715_v60 = vrot.slane %v714_v58, 4 }
 0x24d   : > { %v713_v61 = vadd.f32 %v712_v59, %v711_v56  ;;  %v716_v62 = vadd.f32 %v715_v60, %v714_v58  ;;  %v1172_v56 = vcombine.high %v2490_v42, %v2490_v42  ;;  %v1213_v58 = vrot.slane %v1191_v44, %v2465_v26 }
 0x24e   : > { %v1232_v59 = vrot.slane %v679_v41, %v2465_v26 }
 0x24f   : > { %2168 = vrcp.f32 %v713_v61  ;;  %v717_v63 = vrot.slane %v716_v62, 2 }
 0x250   : > { %v2529_v32 = vrot.slane %v1232_v59, %v2465_v26 }
 0x251   : > { %v718_v0 = vadd.f32 %v717_v63, %v716_v62 }
 0x253   : > { %v719_v1 = vrot.slane %v718_v0, 1 }
 0x255   : > { %v720_v2 = vadd.f32 %v719_v1, %v718_v0  ;;  %v1206_v1 = vrot.slane %v1190_v39, %v2465_v26 }
 0x257   : > { %2170 = vrcp.f32 %v720_v2  ;;  %v1222_v29 = vcombine.high %v1206_v1, %v1206_v1 }
 0x25c   : > { %v2169_v3 = vpop.eup %2168 }
 0x25d   : > { %v723_v4 = vmul.f32 %v2169_v3, %v2161_v49  ;;  %v724_v5 = vmul.f32 %v2169_v3, %v2163_v50  ;;  %v1192_v49 = vcombine.high %v1190_v39, %v1190_v39  ;;  %v1199_v50 = vrot.slane %v1183_v17, %v2465_v26 }
 0x25f   : > { %v727_v6 = vpack.c.bf16 %v724_v5, %v723_v4  ;;  %v1220_v2 = vrot.slane %v1192_v49, %v2465_v26  ;;  %v1221_v3 = vcombine.high %v1199_v50, %v1199_v50  ;;  %v2519_v5 = vrot.slane %v1225_v53, %v2465_v26 }
 0x261   : > { %2041 = vmatprep.mubr.bf16.mxu1 %v727_v6  ;;  %v1224_v30 = vcombine.high %v1220_v2, %v1220_v2  ;;  %v1241_v31 = vcombine.high %v2519_v5, %v2519_v5 }
 0x264   : > { %v2171_v7 = vpop.eup %2170 }
 0x265   : > { %v725_v8 = vmul.f32 %v2171_v7, %v2165_v55  ;;  %v726_v9 = vmul.f32 %v2171_v7, %v2167_v57  ;;  %v1174_v57 = vcombine.high %v2493_v43, %v2493_v43 }
 0x267   : > { %v728_v10 = vpack.c.bf16 %v726_v9, %v725_v8  ;;  %v1223_v9 = vcombine.high %v1213_v58, %v1213_v58 }
 0x269   : > { %2042 = vmatmul.mubr.bf16.vlgmr.msra.gmra.mxu1 %v728_v10  ;;  %v1240_v10 = vcombine.high %v1232_v59, %v1232_v59 }
 0x26b   : > { %v2532_v33 = vrot.slane %v1240_v10, %v2465_v26 }
 0x329   : > { %v2043_v51 = vpop.f32.mrf.mxu1 }
 0x32a   : > { %v944_v54 = vcombine.high %v2043_v51, %v2043_v51  ;;  %v951_v55 = vrot.slane %v2043_v51, %v2465_v26 }
 0x32b   : > { %v827_v60 = vpop.f32.mrf.mxu1 }
 0x32c   : > { %v958_v61 = vrot.slane %v944_v54, %v2465_v26  ;;  %v959_v62 = vcombine.high %v951_v55, %v951_v55  ;;  %v967_v63 = vrot.slane %v951_v55, %v2465_v26  ;;  %v846_v0 = vcombine.high %v827_v60, %v827_v60 }
 0x32d   : > { %v853_v4 = vrot.slane %v827_v60, %v2465_v26 }
 0x32e   : > { %v960_v6 = vcombine.high %v958_v61, %v958_v61  ;;  %v981_v7 = vrot.slane %v959_v62, %v2465_v26  ;;  %v989_v8 = vcombine.high %v967_v63, %v967_v63  ;;  %v1322_v11 = vmul.f32 %v1199_v50, %v967_v63 }
 0x32f   : > { %v974_v16 = vrot.slane %v958_v61, %v2465_v26  ;;  %v860_v22 = vrot.slane %v846_v0, %v2465_v26  ;;  %v861_v27 = vcombine.high %v853_v4, %v853_v4  ;;  %v869_v28 = vrot.slane %v853_v4, %v2465_v26 }
 0x330   : > { %v991_v19 = vcombine.high %v981_v7, %v981_v7  ;;  %v1323_v20 = vmul.f32 %v1213_v58, %v981_v7  ;;  %v988_v23 = vrot.slane %v960_v6, %v2465_v26  ;;  %v1324_v24 = vmul.f32 %v1221_v3, %v989_v8 }
 0x331   : > { %v1370_v14 = vsel %vm1338_vm2, %v1322_v11, 0.0  ;;  %v990_v36 = vcombine.high %v974_v16, %v974_v16  ;;  %v1326_v17 = vmul.f32 %v1206_v1, %v974_v16  ;;  %v862_v39 = vcombine.high %v860_v22, %v860_v22 }
 0x332   : > { %v1325_v34 = vmul.f32 %v1223_v9, %v991_v19  ;;  %v1371_v35 = vsel %vm1338_vm2, %v1323_v20, 0.0  ;;  %v992_v41 = vcombine.high %v988_v23, %v988_v23  ;;  %v1373_v44 = vsel %vm1338_vm2, %v1324_v24, 0.0 }
 0x333   : > { %v1372_v12 = vadd.f32 %v1371_v35, %v1370_v14  ;;  %v883_v49 = vrot.slane %v861_v27, %v2465_v26  ;;  %v891_v50 = vcombine.high %v869_v28, %v869_v28  ;;  %v1327_v51 = vmul.f32 %v1220_v2, %v988_v23  ;;  %v2044_v2 = vpop.f32.mrf.mxu1 }
 0x334   : > { %v876_v54 = vrot.slane %v860_v22, %v2465_v26  ;;  %v1306_v55 = vmul.f32 %v2474_v37, %v869_v28  ;;  %v1375_v58 = vsel %vm1338_vm2, %v1325_v34, 0.0  ;;  %v1270_v62 = vcombine.high %v2529_v32, %v2529_v32 }
 0x335   : > { %v1374_v53 = vadd.f32 %v1373_v44, %v1372_v12  ;;  %v893_v59 = vcombine.high %v883_v49, %v883_v49  ;;  %v1307_v60 = vmul.f32 %v2480_v38, %v883_v49  ;;  %v1308_v61 = vmul.f32 %v1123_v45, %v891_v50  ;;  %v830_v23 = vpop.f32.mrf.mxu1 }
 0x336   : > { %v1328_v63 = vmul.f32 %v1222_v29, %v990_v36  ;;  %v1377_v1 = vsel %vm1338_vm2, %v1326_v17, 0.0  ;;  %v1329_v3 = vmul.f32 %v1224_v30, %v992_v41  ;;  %v1339_v6 = vsel %vm1338_vm2, %v1306_v55, 0.0 }
 0x337   : > { %v1376_v0 = vadd.f32 %v1375_v58, %v1374_v53  ;;  %v1309_v4 = vmul.f32 %v1125_v47, %v893_v59  ;;  %v1340_v7 = vsel %vm1338_vm2, %v1307_v60, 0.0  ;;  %v890_v37 = vrot.slane %v862_v39, %v2465_v26 }
 0x338   : > { %v1310_v45 = vmul.f32 %v2477_v21, %v876_v54  ;;  %v1341_v9 = vadd.f32 %v1340_v7, %v1339_v6  ;;  %v1379_v10 = vsel %vm1338_vm2, %v1327_v51, 0.0  ;;  %v1342_v11 = vsel %vm1338_vm2, %v1308_v61, 0.0 }
 0x339   : > { %v1378_v8 = vadd.f32 %v1377_v1, %v1376_v0  ;;  %v993_v16 = vcombine.high %v2044_v2, %v2044_v2  ;;  %v1000_v19 = vrot.slane %v2044_v2, %v2465_v26  ;;  %v1381_v38 = vsel %vm1338_vm2, %v1328_v63, 0.0 }
 0x33a   : > { %v892_v47 = vcombine.high %v876_v54, %v876_v54  ;;  %v1343_v22 = vadd.f32 %v1342_v11, %v1341_v9  ;;  %v1344_v24 = vsel %vm1338_vm2, %v1309_v4, 0.0  ;;  %v1311_v30 = vmul.f32 %v2483_v25, %v890_v37 }
 0x33b   : > { %v1380_v20 = vadd.f32 %v1379_v10, %v1378_v8  ;;  %v1007_v27 = vrot.slane %v993_v16, %v2465_v26  ;;  %v1008_v28 = vcombine.high %v1000_v19, %v1000_v19  ;;  %v1016_v29 = vrot.slane %v1000_v19, %v2465_v26 }
 0x33c   : > { %v1345_v34 = vadd.f32 %v1344_v24, %v1343_v22  ;;  %v1346_v14 = vsel %vm1338_vm2, %v1310_v45, 0.0  ;;  %v1383_v12 = vsel %vm1338_vm2, %v1329_v3, 0.0  ;;  %v902_v39 = vrot.slane %v830_v23, %v2465_v26 }
 0x33d   : > { %v1382_v35 = vadd.f32 %v1381_v38, %v1380_v20  ;;  %v1030_v36 = vrot.slane %v1008_v28, %v2465_v26  ;;  %v1038_v17 = vcombine.high %v1016_v29, %v1016_v29  ;;  %v894_v41 = vcombine.high %v890_v37, %v890_v37 }
 0x33e   : > { %v1347_v44 = vadd.f32 %v1346_v14, %v1345_v34  ;;  %v1330_v49 = vmul.f32 %v2529_v32, %v1016_v29  ;;  %v1312_v51 = vmul.f32 %v1124_v46, %v892_v47  ;;  %v1009_v53 = vcombine.high %v1007_v27, %v1007_v27 }
 0x33f   : > { %v1384_v50 = vadd.f32 %v1383_v12, %v1382_v35  ;;  %v1040_v54 = vcombine.high %v1030_v36, %v1030_v36  ;;  %v1331_v55 = vmul.f32 %v2532_v33, %v1030_v36  ;;  %v1272_v58 = vcombine.high %v2532_v33, %v2532_v33 }
 0x340   : > { %v1348_v59 = vsel %vm1338_vm2, %v1311_v30, 0.0  ;;  %v1023_v60 = vrot.slane %v1007_v27, %v2465_v26  ;;  %v895_v61 = vcombine.high %v830_v23, %v830_v23  ;;  %v1332_v0 = vmul.f32 %v1270_v62, %v1038_v17 }
 0x341   : > { %v1349_v63 = vadd.f32 %v1348_v59, %v1347_v44  ;;  %v1385_v32 = vsel %vm1338_vm2, %v1330_v49, 0.0  ;;  %v910_v1 = vcombine.high %v902_v39, %v902_v39  ;;  %v1255_v21 = vrot.slane %v2519_v5, %v2465_v26 }
 0x342   : > { %v1269_v46 = vrot.slane %v1241_v31, %v2465_v26  ;;  %v1313_v33 = vmul.f32 %v1126_v48, %v894_v41  ;;  %v1386_v2 = vadd.f32 %v1385_v32, %v1384_v50  ;;  %v1350_v3 = vsel %vm1338_vm2, %v1312_v51, 0.0 }
 0x343   : > { %v1037_v62 = vrot.slane %v1009_v53, %v2465_v26  ;;  %v1333_v4 = vmul.f32 %v1272_v58, %v1040_v54  ;;  %v1387_v6 = vsel %vm1338_vm2, %v1331_v55, 0.0  ;;  %v1039_v7 = vcombine.high %v1023_v60, %v1023_v60 }
 0x344   : > { %v1388_v8 = vadd.f32 %v1387_v6, %v1386_v2  ;;  %v909_v37 = vrot.slane %v895_v61, %v2465_v26  ;;  %v918_v45 = vrot.slane %v902_v39, %v2465_v26  ;;  %v1334_v5 = vmul.f32 %v1255_v21, %v1023_v60 }
 0x345   : > { %v1389_v31 = vsel %vm1338_vm2, %v1332_v0, 0.0  ;;  %v932_v25 = vrot.slane %v910_v1, %v2465_v26  ;;  %v1351_v48 = vadd.f32 %v1350_v3, %v1349_v63  ;;  %v1271_v9 = vcombine.high %v1255_v21, %v1255_v21 }
 0x346   : > { %v1390_v10 = vadd.f32 %v1389_v31, %v1388_v8  ;;  %v940_v11 = vcombine.high %v918_v45, %v918_v45  ;;  %v1352_v16 = vsel %vm1338_vm2, %v1313_v33, 0.0  ;;  %v1041_v19 = vcombine.high %v1037_v62, %v1037_v62 }
 0x347   : > { %v1335_v20 = vmul.f32 %v1269_v46, %v1037_v62  ;;  %v1391_v38 = vsel %vm1338_vm2, %v1333_v4, 0.0  ;;  %v1314_v47 = vmul.f32 %v2490_v42, %v918_v45  ;;  %v911_v23 = vcombine.high %v909_v37, %v909_v37 }
 0x348   : > { %v1392_v22 = vadd.f32 %v1391_v38, %v1390_v10  ;;  %v942_v24 = vcombine.high %v932_v25, %v932_v25  ;;  %v1315_v27 = vmul.f32 %v2493_v43, %v932_v25  ;;  %v1273_v28 = vcombine.high %v1269_v46, %v1269_v46  ;;  %v1965_v10 = vld [vmem:[%s2777_s8] ss:$0 sm:$0xff] }
 0x349   : > { %v1336_v29 = vmul.f32 %v1271_v9, %v1039_v7  ;;  %v1393_v30 = vsel %vm1338_vm2, %v1334_v5, 0.0  ;;  %v1353_v34 = vadd.f32 %v1352_v16, %v1351_v48  ;;  %v925_v35 = vrot.slane %v909_v37, %v2465_v26 }
 0x34a   : > { %v1394_v14 = vadd.f32 %v1393_v30, %v1392_v22  ;;  %v1316_v36 = vmul.f32 %v1172_v56, %v940_v11  ;;  %v1354_v17 = vsel %vm1338_vm2, %v1314_v47, 0.0  ;;  %v1157_v12 = vrot.slane %v2487_v40, %v2465_v26 }
 0x34b   : > { %v1337_v39 = vmul.f32 %v1273_v28, %v1041_v19  ;;  %v1395_v41 = vsel %vm1338_vm2, %v1335_v20, 0.0  ;;  %v1355_v44 = vadd.f32 %v1354_v17, %v1353_v34  ;;  %v939_v50 = vrot.slane %v911_v23, %v2465_v26  ;;  %v1477_v23 = vld [vmem:[%s2795_s1] sm:$0x1] }
 0x34c   : > { %v1396_v49 = vadd.f32 %v1395_v41, %v1394_v14  ;;  %v1317_v51 = vmul.f32 %v1174_v57, %v942_v24  ;;  %v1356_v53 = vsel %vm1338_vm2, %v1315_v27, 0.0  ;;  %v1171_v42 = vrot.slane %v1143_v52, %v2465_v26 }
 0x34d   : > { %v1397_v56 = vsel %vm1338_vm2, %v1336_v29, 0.0  ;;  %v1357_v54 = vadd.f32 %v1356_v53, %v1355_v44  ;;  %v941_v58 = vcombine.high %v925_v35, %v925_v35  ;;  %v1318_v59 = vmul.f32 %v1157_v12, %v925_v35 }
 0x34e   : > { %v1398_v55 = vadd.f32 %v1397_v56, %v1396_v49  ;;  %v1358_v60 = vsel %vm1338_vm2, %v1316_v36, 0.0  ;;  %v1173_v61 = vcombine.high %v1157_v12, %v1157_v12  ;;  %v1399_v63 = vsel %vm1338_vm2, %v1337_v39, 0.0 }
 0x34f   : > { %v1359_v43 = vadd.f32 %v1358_v60, %v1357_v54  ;;  %v943_v57 = vcombine.high %v939_v50, %v939_v50  ;;  %v1319_v0 = vmul.f32 %v1171_v42, %v939_v50  ;;  %v1360_v32 = vsel %vm1338_vm2, %v1317_v51, 0.0  ;;  %v2142_v54 = vld [vmem:[%s2780_s11 + $0x8] sm:$0xff]  }
 0x350   : > { %v1400_v1 = vadd.f32 %v1399_v63, %v1398_v55  ;;  %v1175_v40 = vcombine.high %v1171_v42, %v1171_v42  ;;  %v1320_v52 = vmul.f32 %v1173_v61, %v941_v58  ;;  %v1362_v46 = vsel %vm1338_vm2, %v1318_v59, 0.0  ;;  %v2143_v55 = vld [vmem:[%s2780_s11] sm:$0xff]  }
 0x351   : > { %v1361_v21 = vadd.f32 %v1360_v32, %v1359_v43  ;;  %v1364_v62 = vsel %vm1338_vm2, %v1319_v0, 0.0  ;;  %v1969_v61 = vld [vmem:[%s2778_s9] ss:$0 sm:$0xff] }
 0x352   : > { %v1402_v2 = vpack.c.bf16 %v1400_v1, %v1400_v1  ;;  %v1321_v3 = vmul.f32 %v1175_v40, %v943_v57  ;;  %v1366_v6 = vsel %vm1338_vm2, %v1320_v52, 0.0  ;;  %v1970_v63 = vld [vmem:[%s2779_s10] ss:$0 sm:$0xff]  ;;  %v1592_v43 = vrot.slane %v1969_v61, %v2465_v26 }
 0x353   : > { %v1363_v33 = vadd.f32 %v1362_v46, %v1361_v21  ;;  %v1624_v57 = vrot.slane %v1970_v63, %v2465_v26 }
 0x354   : > { %v1417_v8 = vunpack.c.l.b16 %v1402_v2  ;;  %v1368_v37 = vsel %vm1338_vm2, %v1321_v3, 0.0  ;;  %v1593_v0 = vcombine.high %v1592_v43, %v1592_v43  ;;  %v1600_v21 = vrot.slane %v1592_v43, %v2465_v26 }
 0x355   : > { %v1365_v4 = vadd.f32 %v1364_v62, %v1363_v33  ;;  %v1625_v32 = vcombine.high %v1624_v57, %v1624_v57  ;;  %v1632_v3 = vrot.slane %v1624_v57, %v2465_v26 }
 0x356   : > { %v1418_v31 = vrot.slane %v1417_v8, 7  ;;  %v1607_v40 = vrot.slane %v1593_v0, %v2465_v26 }
 0x357   : > { %v1367_v7 = vadd.f32 %v1366_v6, %v1365_v4  ;;  %v1639_v62 = vrot.slane %v1625_v32, %v2465_v26 }
 0x359   : > { %v1369_v45 = vadd.f32 %v1368_v37, %v1367_v7 }
 0x35b   : > { %v1401_v5 = vpack.c.bf16 %v1369_v45, %v1369_v45 }
 0x35d   : > { %v1416_v25 = vunpack.c.l.b16 %v1401_v5 }
 0x35f   : > { %v1420_v48 = vsel %vm1419_vm3, %v1418_v31, %v1416_v25 }
 0x360   : > { %v1421_v9 = vpack.c.b16 %v1420_v48, %v1420_v48 }
 0x362   : > { %2050 = vmatmul.mubr.msk.bf16.vlgmr.msra.gmra.mxu0 %vm508_vm0, %v1421_v9  ;;  %v2145_v9 = vld [vmem:[%s2782_s13 + $0x30] sm:$0xff]  }
 0x363   : > { %2057 = vmatprep.mubr.msk.bf16.mxu0 %vm2240_vm1, %v2239_v15  ;;  %2054 = vmatpush3.bf16.msra.mxu0 %v2142_v54 }
 0x364   : > { %2055 = vmatprep.subr.bf16.mxu0 %v2239_v15 }
 0x367   : > { %2056 = vmatpush3.bf16.msra.mxu0 %v2143_v55 }
 0x368   : > { %2061 = vmatprep.subr.bf16.mxu0 %v2239_v15 }
 0x422   : > { %v1471_v11 = vpop.f32.mrf.mxu0 }
 0x423   : > { %v1472_v16 = vadd.f32 %v1965_v10, %v1471_v11  ;;  %v2146_v10 = vld [vmem:[%s2782_s13 + $0x28] sm:$0xff]   ;;  %v2147_v11 = vld [vmem:[%s2782_s13 + $0x20] sm:$0xff]  }
 0x424   : > { %v2051_v19 = vpop.f32.mrf.mxu0 }
 0x425   : > { %v1485_v20 = vrot.slane %v1472_v16, %v2465_v26  ;;  %v2148_v16 = vld [vmem:[%s2782_s13 + $0x18] sm:$0xff]   ;;  %v2149_v19 = vld [vmem:[%s2782_s13 + $0x10] sm:$0xff]  }
 0x426   : > { %v1474_v38 = vpop.f32.mrf.mxu0 }
 0x427   : > { %v1486_v47 = vcombine.high %v1485_v20, %v1485_v20  ;;  %v1493_v22 = vrot.slane %v1485_v20, %v2465_v26  ;;  %v2150_v20 = vld [vmem:[%s2782_s13 + $0x8] sm:$0xff]   ;;  %v2151_v38 = vld [vmem:[%s2782_s13] sm:$0xff]  }
 0x428   : > { %v2052_v24 = vpop.f32.mrf.mxu0 }
 0x429   : > { %v1500_v27 = vrot.slane %v1486_v47, %v2465_v26  ;;  %v2636_v28 = vadd.f32 %v1493_v22, %v1477_v23  ;;  %v1971_v47 = vld [vmem:[%s2781_s12] ss:$0 sm:$0xff] }
 0x42b   : > { %v2638_v29 = vadd.f32 %v1500_v27, %v1477_v23 }
 0x42d   : > { %v1507_v30 = vcombine.low %v2636_v28, %v2638_v29 }
 0x42f   : > { %v1514_v34 = vrot.slane %v1507_v30, %v2465_v26 }
 0x431   : > { %v1521_v14 = vrot.slane %v1514_v34, %v2465_v26 }
 0x433   : > { %v1524_v35 = vsel %vm1523_vm4, %v1521_v14, 0.0 }
 0x434   : > { %1525 = vadd.xlane.f32.xlu0 %v1524_v35 }
 0x4bd   : > { %v1526_v36 = vpop.xlane.xlu0 %1525 }
 0x4be   : > { %v1527_v17 = vmul.f32 0.03125, %v1526_v36 }
 0x4c0   : > { %v1532_v12 = vrot.slane %v1527_v17, %v2432_v13  ;;  %v1536_v39 = vrot.slane %v1527_v17, %v2459_v18 }
 0x4c2   : > { %v1539_v41 = vsub.f32 %v2636_v28, %v1532_v12  ;;  %v1540_v44 = vsub.f32 %v2638_v29, %v1536_v39 }
 0x4c4   : > { %v1541_v49 = vmul.f32 %v1539_v41, %v1539_v41  ;;  %v1542_v50 = vmul.f32 %v1540_v44, %v1540_v44 }
 0x4c6   : > { %v1545_v51 = vcombine.low %v1541_v49, %v1542_v50 }
 0x4c8   : > { %v1552_v53 = vrot.slane %v1545_v51, %v2465_v26 }
 0x4ca   : > { %v1559_v42 = vrot.slane %v1552_v53, %v2465_v26 }
 0x4cc   : > { %v1561_v56 = vsel %vm1523_vm4, %v1559_v42, 0.0 }
 0x4cd   : > { %1562 = vadd.xlane.f32.xlu1 %v1561_v56 }
 0x556   : > { %v1563_v58 = vpop.xlane.xlu1 %1562 }
 0x557   : > { %v1564_v59 = vmul.f32 0.03125, %v1563_v58 }
 0x559   : > { %v1565_v60 = vadd.f32 1e-05, %v1564_v59 }
 0x55b   : > { %2172 = vrsqrt.f32 %v1565_v60 }
 0x568   : > { %v2173_v1 = vpop.eup %2172 }
 0x569   : > { %v1571_v52 = vrot.slane %v2173_v1, %v2432_v13  ;;  %v1575_v46 = vrot.slane %v2173_v1, %v2459_v18  ;;  %v2144_v13 = vld [vmem:[%s2782_s13 + $0x38] sm:$0xff]  }
 0x56b   : > { %v1578_v33 = vmul.f32 %v1571_v52, %v1539_v41  ;;  %v1579_v2 = vmul.f32 %v1575_v46, %v1540_v44 }
 0x56d   : > { %v1610_v4 = vmul.f32 %v1600_v21, %v1578_v33  ;;  %v1611_v6 = vmul.f32 %v1607_v40, %v1579_v2 }
 0x56f   : > { %v1642_v7 = vadd.f32 %v1632_v3, %v1610_v4  ;;  %v1643_v8 = vadd.f32 %v1639_v62, %v1611_v6 }
 0x571   : > { %v1644_v37 = vpack.c.bf16 %v1642_v7, %v1642_v7  ;;  %v1645_v45 = vpack.c.bf16 %v1643_v8, %v1643_v8 }
 0x573   : > { %v1660_v5 = vunpack.c.l.b16 %v1645_v45  ;;  %v1659_v31 = vunpack.c.l.b16 %v1644_v37 }
 0x575   : > { %v1661_v25 = vrot.slane %v1660_v5, 7 }
 0x577   : > { %v1662_v48 = vsel %vm1419_vm3, %v1661_v25, %v1659_v31 }
 0x578   : > { %v1663_v18 = vpack.c.b16 %v1662_v48, %v1662_v48 }
 0x57a   : > { %2058 = vmatmul.mubr.msk.bf16.vlgmr.msra.gmra.mxu0 %vm508_vm0, %v1663_v18 }
 0x57b   : > { %2062 = vmatpush3.bf16.msra.mxu0 %v2144_v13  ;;  %2077 = vmatprep.mubr.msk.bf16.mxu0 %vm2240_vm1, %v2239_v15 }
 0x57c   : > { %2063 = vmatprep.subr.bf16.mxu0 %v2239_v15 }
 0x57f   : > { %2064 = vmatpush3.bf16.msra.mxu0 %v2145_v9 }
 0x580   : > { %2065 = vmatprep.subr.bf16.mxu0 %v2239_v15 }
 0x583   : > { %2066 = vmatpush3.bf16.msra.mxu0 %v2146_v10 }
 0x584   : > { %2067 = vmatprep.subr.bf16.mxu0 %v2239_v15 }
 0x587   : > { %2068 = vmatpush3.bf16.msra.mxu0 %v2147_v11 }
 0x588   : > { %2069 = vmatprep.subr.bf16.mxu0 %v2239_v15 }
 0x58b   : > { %2070 = vmatpush3.bf16.msra.mxu0 %v2148_v16 }
 0x58c   : > { %2071 = vmatprep.subr.bf16.mxu0 %v2239_v15 }
 0x58f   : > { %2072 = vmatpush3.bf16.msra.mxu0 %v2149_v19 }
 0x590   : > { %2073 = vmatprep.subr.bf16.mxu0 %v2239_v15 }
 0x593   : > { %2074 = vmatpush3.bf16.msra.mxu0 %v2150_v20 }
 0x594   : > { %2075 = vmatprep.subr.bf16.mxu0 %v2239_v15  ;;  %v1975_v15 = vld [vmem:[%s2783_s14] ss:$0 sm:$0xff] }
 0x597   : > { %2076 = vmatpush3.bf16.msra.mxu0 %v2151_v38 }
 0x63a   : > { %v1713_v22 = vpop.f32.mrf.mxu0 }
 0x63b   : > { %v1714_v23 = vadd.f32 %v1971_v47, %v1713_v22 }
 0x63c   : > { %v2059_v24 = vpop.f32.mrf.mxu0 }
 0x63d   : > { %v1720_v27 = vmul.f32 0.70710677, %v1714_v23  ;;  %v1719_v35 = vmul.f32 0.5, %v1714_v23 }
 0x63e   : > { %v1716_v30 = vpop.f32.mrf.mxu0 }
 0x63f   : > { %2174 = verf.f32 %v1720_v27 }
 0x640   : > { %v2060_v34 = vpop.f32.mrf.mxu0 }
 0x64c   : > { %v2175_v14 = vpop.eup %2174 }
 0x64d   : > { %v1722_v36 = vadd.f32 1.0, %v2175_v14 }
 0x64f   : > { %v1723_v17 = vmul.f32 %v1722_v36, %v1719_v35 }
 0x651   : > { %v1724_v12 = vpack.c.bf16 %v1723_v17, %v1723_v17 }
 0x653   : > { %2078 = vmatmul.mubr.bf16.vlgmr.msra.gmra.mxu0 %v1724_v12 }
 0x713   : > { %v1830_v39 = vpop.f32.mrf.mxu0 }
 0x714   : > { %v1831_v41 = vadd.f32 %v1975_v15, %v1830_v39 }
 0x715   : > { %v2079_v44 = vpop.f32.mrf.mxu0 }
 0x716   : > { %v1843_v49 = vrot.slane %v1831_v41, %v2465_v26 }
 0x717   : > { %v1833_v50 = vpop.f32.mrf.mxu0 }
 0x718   : > { %v1844_v51 = vcombine.high %v1843_v49, %v1843_v49  ;;  %v1851_v53 = vrot.slane %v1843_v49, %v2465_v26 }
 0x719   : > { %v2080_v42 = vpop.f32.mrf.mxu0 }
 0x71a   : > { %v1858_v56 = vrot.slane %v1844_v51, %v2465_v26  ;;  %v1861_v54 = vadd.f32 %v1851_v53, %v2636_v28 }
 0x71c   : > { %v1862_v55 = vadd.f32 %v1858_v56, %v2638_v29  ;;  %1863 = vst.msk [vmem:[%s490_s17] sm:$0x1] %vm1338_vm2, %v1861_v54 }
 0x71e   : > { %1864 = vst.msk [vmem:[%s490_s17 + $0x1] sm:$0x1] %vm1338_vm2, %v1862_v55 }
 0x71f   : > { %2189 = shalt.err (!%p2186_p3)
}
 0x720   : > { %s2190_s0 = scalar_lea.hbm %s2722_s26, 32  ;;  %s2194_s16 = scalar_lea.hbm %s2784_s15, 64 }
 0x721   : > { %p2191_p4 = scmp.ne.s32.totalorder %s2722_s26, %s2190_s0  ;;  %p2195_p9 = scmp.lt.s32.totalorder %s2722_s26, %s2784_s15 }
 0x722   : > { %p2196_p10 = scmp.lt.s32.totalorder %s2194_s16, %s2190_s0 }
 0x723   : > { %p2192_p7 = pnand %p2191_p4, %p2363_p5 }
 0x724   : > { %p2197_p11 = por %p2196_p10, %p2195_p9 }
 0x725   : > { %p2193_p8 = pneg %p2192_p7 }
 0x727   : > { %p2198_p12 = pnand %p2197_p11, %p2193_p8 }
 0x729   : > { %2201 = shalt.err (!%p2198_p12)
}
 0x72a   : > { %s2243_s30 = smov 16   ;;  %s2244_s25 = smov 1  }
 0x72b   : > { %2081 = dma.vmem_to_hbm [thread:$0]  (%p2363_p5), %s2724_s23, 32, %s2722_s26, %s2729_s22, %s2243_s30, %s2243_s30, %s2244_s25  }
 0x72c PF: > { %p2087_p13 = scmp.ge.s32.totalorder %s2236_s21, 2  ;;  %s1894_s1 = sand.u32 1, %s2224_s18  }
 0x72d   : > { %s1895_s2 = scalar_lea.sflag [#allocation3], %s1894_s1 }
 0x72e   : > { %p2084_p0 = pnand %p2087_p13, %p2367_p6 }
 0x730   : > { %p2085_p1 = pneg %p2084_p0 }
 0x732   : > { %2219 = dma.done.wait (%p2085_p1), %s1895_s2, 32  }
 0x733   : > { %2221 = vsyncadd (%p2085_p1), %s1895_s2, 4294967264  ;;  %s2796_s3 = sld [smem:[#allocation5_spill]]  ;;  %p25_p2 = scmp.ge.s32.totalorder %s2350_s24, 4  }
 0x734   : > { %s2797_s18 = smov %s2228_s19  ;;  %s2798_s19 = smov %s2232_s20 }
 0x735   : > { %s2800_s21 = smov %s2350_s24  ;;  %27 = sbr.rel (!%p25_p2) target bundleno = 8 (0x8), region = 115 }
 0x739   : > { %s2799_s20 = smov %s2796_s3 }
 0x73a   :  { %1900 = vsyncpa [#allocation3], 1 }
 0x73b   :  { %1902 = vsyncpa [#allocation3 + $0x1], 1 }

// kernel: tpu_custom_call.1
= control target key start
LH: loop header
LB: loop body
LE: loop exit
PB: predicated region body
PF: predicated region fallthrough
CT: control target
= control target key end

     0   :  { %s2769_s0 = inlined_call_operand.vmem [shape: bf16[4,16,32], index: 0, kind: input, shape index: {}]   ;;  %s2770_s1 = inlined_call_operand.vmem [shape: f32[1,32], index: 1, kind: input, shape index: {}]   ;;  %s2771_s2 = inlined_call_operand.vmem [shape: f32[1,32], index: 2, kind: input, shape index: {}]   ;;  %s2772_s3 = inlined_call_operand.vmem [shape: f32[1,32], index: 3, kind: input, shape index: {}]   ;;  %s2773_s4 = inlined_call_operand.vmem [shape: bf16[32,160], index: 4, kind: input, shape index: {}]   ;;  %s2774_s5 = inlined_call_operand.vmem [shape: f32[1,160], index: 5, kind: input, shape index: {}]   ;;  %s2775_s6 = inlined_call_operand.vmem [shape: bf16[128,32], index: 6, kind: input, shape index: {}]   ;;  %s2776_s7 = inlined_call_operand.vmem [shape: bf16[32,32], index: 7, kind: input, shape index: {}]   ;;  %s2777_s8 = inlined_call_operand.vmem [shape: f32[1,32], index: 8, kind: input, shape index: {}]   ;;  %s2778_s9 = inlined_call_operand.vmem [shape: f32[1,32], index: 9, kind: input, shape index: {}]   ;;  %s2779_s10 = inlined_call_operand.vmem [shape: f32[1,32], index: 10, kind: input, shape index: {}]   ;;  %s2780_s11 = inlined_call_operand.vmem [shape: bf16[32,128], index: 11, kind: input, shape index: {}]   ;;  %s2781_s12 = inlined_call_operand.vmem [shape: f32[1,128], index: 12, kind: input, shape index: {}]   ;;  %s2782_s13 = inlined_call_operand.vmem [shape: bf16[128,32], index: 13, kind: input, shape index: {}]   ;;  %s2783_s14 = inlined_call_operand.vmem [shape: f32[1,32], index: 14, kind: input, shape index: {}]   ;;  %s2784_s15 = inlined_call_operand.hbm [shape: f32[4,1,32], index: 15, kind: output, shape index: {}]  }
   0x1   :  { %2785 = sst [smem:[#allocation6_spill]] %s2769_s0 }
   0x2   :  { %2786 = sst [smem:[#allocation7_spill]] %s2770_s1 }
   0x3   :  { %2787 = sst [smem:[#allocation8_spill]] %s2771_s2 }
   0x4   :  { %2788 = sst [smem:[#allocation9_spill]] %s2772_s3 }
   0x5   :  { %20 = vsyncpa [#allocation3], 0 }
   0x6   :  { %22 = vsyncpa [#allocation3 + $0x1], 0  ;;  %s2325_s18 = smov 0   ;;  %s2327_s19 = smov 0  }
   0x7   :  { %s2329_s20 = smov 0   ;;  %s2331_s21 = smov 0  }
   0x8 LB: > { %s2346_s22 = sadd.s32 4294967295, %s2236_s21   ;;  %s1941_s23 = sadd.s32 4294967294, %s2236_s21   ;;  %s2236_s21 = sphi %s2331_s21, %s2800_s21   ;;  %s2232_s20 = sphi %s2329_s20, %s2799_s20   ;;  %s2228_s19 = sphi %s2327_s19, %s2798_s19   ;;  %s2224_s18 = sphi %s2325_s18, %s2797_s18  }
   0x9   : > { %s2350_s24 = sadd.s32 1, %s2236_s21   ;;  %s355_s25 = sadd.s32 1, %s2232_s20 }
   0xa   : > { %s352_s26 = ssub.s32 %s2236_s21, %s2350_s24  ;;  %p365_p0 = scmp.ne.s32.totalorder %s2232_s20, %s2228_s19 }
   0xb   : > { %p353_p1 = scmp.eq.s32.totalorder %s352_s26, 0  ;;  %p366_p2 = scmp.eq.s32.totalorder %s2346_s22, 1 }
   0xc   : > { %p371_p3 = scmp.ne.s32.totalorder %s2228_s19, %s2224_s18  ;;  %p372_p4 = scmp.eq.s32.totalorder %s1941_s23, 1 }
   0xd   : > { %s2361_s27 = scalar_select %p353_p1, %s2232_s20, %s355_s25  }
   0xe   : > { %p2363_p5 = por %p366_p2, %p365_p0  ;;  %p2367_p6 = por %p372_p4, %p371_p3 }
   0xf   : > { %2789 = sst [smem:[#allocation5_spill]] %s2361_s27  ;;  %p1944_p7 = scmp.ge.s32.totalorder %s2236_s21, 1 }
  0x10   : > { %p442_p8 = scmp.lt.s32.totalorder %s2236_s21, 3 }
  0x12   : > { %p443_p9 = pnand %p1944_p7, %p442_p8 }
  0x13   : > { %s1946_s30 = sshll.u32 (!%p443_p9), %s2346_s22, 1  ;;  %s2792_s0 = sld [smem:[#allocation6_spill]] (!%p443_p9) }
  0x14   : > { %446 = sbr.rel (%p443_p9) target bundleno = 1836 (0x72c), region = 80  ;;  %p492_p10 = scmp.lt.s32.totalorder (!%p443_p9), %s1946_s30, 3 }
  0x15   : > { %s2793_s2 = sld [smem:[#allocation8_spill]] (!%p443_p9) }
  0x16   : > { %s2794_s3 = sld [smem:[#allocation9_spill]] (!%p443_p9) }
  0x17   : > { %s2795_s1 = sld [smem:[#allocation7_spill]] (!%p443_p9) }
  0x19   : > { %s2802_s30 = smov (!%p492_p10, %s1946_s30), 3  ;;  %vm508_vm0 = vcmask 261120   ;;  %v2126_v30 = vld [vmem:[%s2773_s4 + $0x14] ss:$8 sps:$4 sm:$0xff]   ;;  %v2128_v31 = vld [vmem:[%s2773_s4 + $0x10] ss:$8 sps:$4 sm:$0xff]  }
  0x1a   : > { %s1989_s16 = sshll.u32 %s2802_s30, 3  ;;  %v2129_v32 = vld [vmem:[%s2773_s4 + $0x4] ss:$8 sps:$4 sm:$0xff]   ;;  %640 = vmatprep.subr.bf16.mxu1 %v2126_v30  ;;  %v2238_v33 = vmov 0   ;;  %v2131_v34 = vld [vmem:[%s2773_s4] ss:$8 sps:$4 sm:$0xff]  }
  0x1b   : > { %s496_s25 = scalar_lea.vmem %s2792_s0, %s1989_s16  ;;  %660 = vmatprep.mubr.bf16.mxu1 %v2238_v33  ;;  %641 = vmatpush1.bf16.msra.mxu1 %v2128_v31  ;;  %v1949_v49 = vld [vmem:[%s2793_s2] ss:$0 sm:$0xff]  ;;  %vm2240_vm1 = vmmov 0   ;;  %vm1338_vm2 = vcmask 253952   ;;  %vm1419_vm3 = vcmask 1041409   ;;  %vm1523_vm4 = vcmask 254976  }
  0x1c   : > { %v1992_v0 = vld [vmem:[%s496_s25] sm:$0xff]   ;;  %v1999_v1 = vld [vmem:[%s496_s25 + $0x8] sm:$0xff]   ;;  %642 = vmatprep.subr.bf16.mxu1 %v2129_v32  ;;  %s488_s0 = sand.u32 1, %s2228_s19   ;;  %s1990_s16 = sshll.u32 %s2346_s22, 5 }
  0x1d   : > { %v1993_v2 = vunpack.c.l.bf16 %v1992_v0  ;;  %v1997_v3 = vunpack.c.l.bf16 %v1999_v1  ;;  %v1994_v4 = vunpack.c.h.bf16 %v1992_v0  ;;  %v1998_v5 = vunpack.c.h.bf16 %v1999_v1  ;;  %v1950_v54 = vld [vmem:[%s2794_s3] ss:$0 sm:$0xff]  ;;  %s1945_s30 = sshll.u32 %s488_s0, 1  ;;  %s2722_s26 = scalar_lea.hbm %s2784_s15, %s1990_s16 }
  0x1e   : > { %s490_s17 = scalar_lea.vmem [#allocation2], %s1945_s30  ;;  %s2729_s22 = scalar_lea.sflag [#allocation3], %s488_s0 }
  0x1f   : > { %v509_v6 = vsel %vm508_vm0, %v1993_v2, 0.0  ;;  %v515_v7 = vsel %vm508_vm0, %v1997_v3, 0.0  ;;  %v512_v8 = vsel %vm508_vm0, %v1994_v4, 0.0  ;;  %v518_v9 = vsel %vm508_vm0, %v1998_v5, 0.0  ;;  %643 = vmatpush1.bf16.msra.mxu1 %v2131_v34  ;;  %s1879_s23 = sshll.u32 %s490_s17, 4  ;;  %s2242_s16 = smov [#allocation2]   ;;  %s2724_s23 = int_to_ptr.vmem [resolvable:$true] %s1879_s23 }
  0x20   : > { %510 = vadd.xlane.f32.xlu0 %v509_v6  ;;  %516 = vadd.xlane.f32.xlu1 %v515_v7  ;;  %v2135_v6 = vld [vmem:[%s2775_s6 + $0x20] sm:$0xff]   ;;  %v2136_v7 = vld [vmem:[%s2775_s6 + $0x18] sm:$0xff]   ;;  %s2176_s30 = scalar_lea.vmem %s2724_s23, 32  ;;  %s2180_s25 = sshll.u32 %s2242_s16, 4  ;;  %s2181_s25 = int_to_ptr.vmem [resolvable:$false] %s2180_s25 }
  0x21   : > { %p2177_p11 = scmp.ne.s32.totalorder %s2724_s23, %s2176_s30  ;;  %s2182_s27 = scalar_lea.vmem %s2181_s25, 64 }
  0x22   : > { %p2183_p0 = scmp.lt.s32.totalorder %s2724_s23, %s2181_s25  ;;  %p2184_p1 = scmp.lt.s32.totalorder %s2182_s27, %s2176_s30 }
  0x23   : > { %p2178_p12 = pnand %p2177_p11, %p2363_p5 }
  0x24   : > { %513 = vadd.xlane.f32.xlu0 %v512_v8  ;;  %519 = vadd.xlane.f32.xlu1 %v518_v9  ;;  %v2137_v8 = vld [vmem:[%s2775_s6 + $0x10] sm:$0xff]   ;;  %v2138_v9 = vld [vmem:[%s2775_s6 + $0x8] sm:$0xff]   ;;  %p2185_p2 = por %p2184_p1, %p2183_p0 }
  0x25   : > { %p2179_p13 = pneg %p2178_p12 }
  0x27   : > { %p2186_p3 = pnand %p2185_p2, %p2179_p13 }
  0xa9   : > { %v511_v10 = vpop.xlane.xlu0 %510  ;;  %v517_v11 = vpop.xlane.xlu1 %516 }
  0xaa   : > { %v522_v12 = vmul.f32 0.03125, %v511_v10  ;;  %v524_v13 = vmul.f32 0.03125, %v517_v11  ;;  %v2139_v10 = vld [vmem:[%s2775_s6] sm:$0xff]   ;;  %v592_v11 = vlaneseq }
  0xac   : > { %v526_v14 = vsub.f32 %v1993_v2, %v522_v12  ;;  %v528_v15 = vsub.f32 %v1997_v3, %v524_v13  ;;  %v2132_v3 = vld [vmem:[%s2775_s6 + $0x38] sm:$0xff]   ;;  %v2429_v12 = vshrl.u32 %v592_v11, 7  ;;  %v2140_v11 = vld [vmem:[%s2776_s7 + $0x8] sm:$0xff]  }
  0xad   : > { %v514_v16 = vpop.xlane.xlu0 %513  ;;  %v520_v17 = vpop.xlane.xlu1 %519  ;;  %2025 = vmatprep.subr.bf16.mxu1 %v2132_v3 }
  0xae   : > { %v523_v18 = vmul.f32 0.03125, %v514_v16  ;;  %v525_v19 = vmul.f32 0.03125, %v520_v17  ;;  %v530_v20 = vmul.f32 %v526_v14, %v526_v14  ;;  %v532_v21 = vmul.f32 %v528_v15, %v528_v15 }
  0xaf   : > { %v2432_v13 = vsub.s32 0, %v2429_v12 }
  0xb0   : > { %v527_v22 = vsub.f32 %v1994_v4, %v523_v18  ;;  %v529_v23 = vsub.f32 %v1998_v5, %v525_v19  ;;  %v534_v24 = vsel %vm508_vm0, %v530_v20, 0.0  ;;  %v540_v25 = vsel %vm508_vm0, %v532_v21, 0.0  ;;  %v2133_v4 = vld [vmem:[%s2775_s6 + $0x30] sm:$0xff]   ;;  %v2134_v5 = vld [vmem:[%s2775_s6 + $0x28] sm:$0xff]  }
  0xb1   : > { %535 = vadd.xlane.f32.xlu0 %v534_v24 }
  0xb2   : > { %v531_v26 = vmul.f32 %v527_v22, %v527_v22  ;;  %v533_v27 = vmul.f32 %v529_v23, %v529_v23 }
  0xb4   : > { %v537_v28 = vsel %vm508_vm0, %v531_v26, 0.0  ;;  %v543_v29 = vsel %vm508_vm0, %v533_v27, 0.0 }
  0xb5   : > { %541 = vadd.xlane.f32.xlu0 %v540_v25  ;;  %538 = vadd.xlane.f32.xlu1 %v537_v28 }
  0xb9   : > { %544 = vadd.xlane.f32.xlu1 %v543_v29 }
 0x13a   : > { %v536_v35 = vpop.xlane.xlu0 %535 }
 0x13b   : > { %v546_v36 = vmul.f32 0.03125, %v536_v35 }
 0x13d   : > { %v550_v37 = vadd.f32 1e-05, %v546_v36 }
 0x13e   : > { %v539_v38 = vpop.xlane.xlu1 %538  ;;  %v542_v39 = vpop.xlane.xlu0 %541 }
 0x13f   : > { %2152 = vrsqrt.f32 %v550_v37  ;;  %v547_v40 = vmul.f32 0.03125, %v539_v38  ;;  %v548_v41 = vmul.f32 0.03125, %v542_v39 }
 0x141   : > { %v551_v42 = vadd.f32 1e-05, %v547_v40  ;;  %v552_v43 = vadd.f32 1e-05, %v548_v41 }
 0x142   : > { %v545_v44 = vpop.xlane.xlu1 %544 }
 0x143   : > { %2154 = vrsqrt.f32 %v551_v42  ;;  %v549_v45 = vmul.f32 0.03125, %v545_v44 }
 0x144   : > { %2156 = vrsqrt.f32 %v552_v43 }
 0x145   : > { %v553_v46 = vadd.f32 1e-05, %v549_v45 }
 0x147   : > { %2158 = vrsqrt.f32 %v553_v46 }
 0x14c   : > { %v2153_v47 = vpop.eup %2152 }
 0x14d   : > { %v558_v48 = vmul.f32 %v2153_v47, %v526_v14  ;;  %v2437_v14 = vld [vmem:[%s2774_s5] sm:$0x3] }
 0x14e   : > { %v595_v16 = vrot.slane %v2437_v14, %v2432_v13 }
 0x14f   : > { %v569_v52 = vmul.f32 %v1949_v49, %v558_v48 }
 0x150   : > { %v2155_v50 = vpop.eup %2154 }
 0x151   : > { %v559_v51 = vmul.f32 %v2155_v50, %v527_v22  ;;  %v2157_v53 = vpop.eup %2156  ;;  %v580_v57 = vadd.f32 %v1950_v54, %v569_v52 }
 0x152   : > { %v560_v59 = vmul.f32 %v2157_v53, %v528_v15 }
 0x153   : > { %v570_v55 = vmul.f32 %v1949_v49, %v559_v51 }
 0x154   : > { %v2159_v56 = vpop.eup %2158  ;;  %v571_v63 = vmul.f32 %v1949_v49, %v560_v59 }
 0x155   : > { %v581_v58 = vadd.f32 %v1950_v54, %v570_v55  ;;  %v561_v60 = vmul.f32 %v2159_v56, %v529_v23 }
 0x156   : > { %v582_v1 = vadd.f32 %v1950_v54, %v571_v63 }
 0x157   : > { %v584_v61 = vpack.c.bf16 %v581_v58, %v580_v57  ;;  %v572_v62 = vmul.f32 %v1949_v49, %v561_v60 }
 0x159   : > { %1955 = vmatmul.mubr.msk.bf16.vlgmr.msra.gmra.mxu1 %vm508_vm0, %v584_v61  ;;  %v583_v0 = vadd.f32 %v1950_v54, %v572_v62 }
 0x15a   : > { %670 = vmatprep.mubr.bf16.mxu1 %v2238_v33  ;;  %2026 = vmatpush3.bf16.msra.mxu1 %v2132_v3 }
 0x15b   : > { %v585_v2 = vpack.c.bf16 %v583_v0, %v582_v1  ;;  %2027 = vmatprep.subr.bf16.mxu1 %v2133_v4 }
 0x15e   : > { %2028 = vmatpush3.bf16.msra.mxu1 %v2133_v4 }
 0x15f   : > { %2029 = vmatprep.subr.bf16.mxu1 %v2134_v5 }
 0x161   : > { %1956 = vmatmul.mubr.msk.bf16.gmra.mxu1 %vm508_vm0, %v585_v2 }
 0x162   : > { %2030 = vmatpush3.bf16.msra.mxu1 %v2134_v5 }
 0x163   : > { %2031 = vmatprep.subr.bf16.mxu1 %v2135_v6 }
 0x166   : > { %2032 = vmatpush3.bf16.msra.mxu1 %v2135_v6 }
 0x167   : > { %2033 = vmatprep.subr.bf16.mxu1 %v2136_v7 }
 0x16a   : > { %2034 = vmatpush3.bf16.msra.mxu1 %v2136_v7 }
 0x16b   : > { %2035 = vmatprep.subr.bf16.mxu1 %v2137_v8 }
 0x16e   : > { %2036 = vmatpush3.bf16.msra.mxu1 %v2137_v8 }
 0x16f   : > { %2037 = vmatprep.subr.bf16.mxu1 %v2138_v9 }
 0x172   : > { %2038 = vmatpush3.bf16.msra.mxu1 %v2138_v9 }
 0x173   : > { %2039 = vmatprep.subr.bf16.mxu1 %v2139_v10 }
 0x176   : > { %2040 = vmatpush3.bf16.msra.mxu1 %v2139_v10 }
 0x219   : > { %v662_v15 = vpop.f32.mrf.mxu1 }
 0x21a   : > { %v663_v19 = vadd.f32 %v662_v15, %v595_v16  ;;  %v2239_v15 = vmov 0.0  }
 0x21b   : > { %v2441_v17 = vpop.f32.mrf.mxu1  ;;  %2045 = vmatprep.subr.bf16.mxu0 %v2239_v15  ;;  %2049 = vmatprep.mubr.msk.bf16.mxu0 %vm2240_vm1, %v2239_v15 }
 0x21c   : > { %2046 = vmatpush3.bf16.msra.mxu0 %v2140_v11 }
 0x21d   : > { %v666_v18 = vpop.f32.mrf.mxu1  ;;  %2047 = vmatprep.subr.bf16.mxu0 %v2239_v15 }
 0x21e   : > { %v667_v20 = vadd.f32 %v666_v18, %v595_v16  ;;  %v2459_v18 = vsub.s32 1, %v2429_v12 }
 0x21f   : > { %v2443_v21 = vpop.f32.mrf.mxu1 }
 0x220   : > { %v681_v22 = vmax.f32 %v663_v19, %v667_v20 }
 0x221   : > { %v672_v23 = vpop.f32.mrf.mxu1 }
 0x222   : > { %v682_v24 = vrot.slane %v681_v22, 4  ;;  %v673_v31 = vadd.f32 %v672_v23, %v595_v16 }
 0x223   : > { %v2445_v25 = vpop.f32.mrf.mxu1 }
 0x224   : > { %v683_v26 = vmax.f32 %v681_v22, %v682_v24  ;;  %v599_v22 = vrot.slane %v2437_v14, %v2459_v18 }
 0x225   : > { %v676_v27 = vpop.f32.mrf.mxu1 }
 0x226   : > { %v684_v28 = vrot.slane %v683_v26, 2  ;;  %v677_v29 = vadd.f32 %v676_v27, %v595_v16  ;;  %v2141_v16 = vld [vmem:[%s2776_s7] sm:$0xff]   ;;  %v665_v24 = vadd.f32 %v2441_v17, %v599_v22 }
 0x227   : > { %2048 = vmatpush3.bf16.msra.mxu0 %v2141_v16 }
 0x228   : > { %v685_v30 = vmax.f32 %v683_v26, %v684_v28  ;;  %v688_v33 = vmax.f32 %v673_v31, %v677_v29  ;;  %2053 = vmatprep.subr.bf16.mxu0 %v2239_v15  ;;  %v1078_v27 = vcombine.high %v665_v24, %v665_v24  ;;  %v669_v28 = vadd.f32 %v2443_v21, %v599_v22 }
 0x22a   : > { %v686_v32 = vrot.slane %v685_v30, 1  ;;  %v689_v35 = vrot.slane %v688_v33, 4 }
 0x22c   : > { %v687_v34 = vmax.f32 %v685_v30, %v686_v32  ;;  %v690_v38 = vmax.f32 %v688_v33, %v689_v35  ;;  %v1127_v35 = vcombine.high %v669_v28, %v669_v28 }
 0x22e   : > { %v695_v36 = vsub.f32 %v663_v19, %v687_v34  ;;  %v696_v37 = vsub.f32 %v667_v20, %v687_v34  ;;  %v691_v41 = vrot.slane %v690_v38, 2  ;;  %v2241_v19 = vmov 1966171168  }
 0x22f   : > { %v848_v20 = vunpack.c.l.s4 %v2241_v19 }
 0x230   : > { %v699_v39 = vmul.f32 1.442695, %v695_v36  ;;  %v701_v40 = vmul.f32 1.442695, %v696_v37  ;;  %v692_v42 = vmax.f32 %v690_v38, %v691_v41 }
 0x231   : > { %v849_v23 = vunpack.c.0.s8 %v848_v20 }
 0x232   : > { %2160 = vpow2.f32 %v699_v39  ;;  %v693_v43 = vrot.slane %v692_v42, 1 }
 0x233   : > { %2162 = vpow2.f32 %v701_v40  ;;  %v2465_v26 = vsub.s32 %v849_v23, %v2429_v12  ;;  %v678_v12 = vpop.f32.mrf.mxu1 }
 0x234   : > { %v694_v44 = vmax.f32 %v692_v42, %v693_v43  ;;  %v679_v41 = vadd.f32 %v678_v12, %v599_v22 }
 0x235   : > { %v1092_v30 = vrot.slane %v1078_v27, %v2465_v26  ;;  %v1134_v32 = vrot.slane %v669_v28, %v2465_v26  ;;  %v2487_v40 = vrot.slane %v1127_v35, %v2465_v26 }
 0x236   : > { %v697_v45 = vsub.f32 %v673_v31, %v694_v44  ;;  %v698_v46 = vsub.f32 %v677_v29, %v694_v44  ;;  %v1085_v29 = vrot.slane %v665_v24, %v2465_v26  ;;  %v675_v31 = vadd.f32 %v2445_v25, %v599_v22 }
 0x237   : > { %v1094_v34 = vcombine.high %v1092_v30, %v1092_v30  ;;  %v1142_v36 = vcombine.high %v1134_v32, %v1134_v32  ;;  %v2477_v21 = vrot.slane %v1092_v30, %v2465_v26  ;;  %v2490_v42 = vrot.slane %v1134_v32, %v2465_v26 }
 0x238   : > { %v703_v47 = vmul.f32 1.442695, %v697_v45  ;;  %v705_v48 = vmul.f32 1.442695, %v698_v46  ;;  %v1093_v33 = vcombine.high %v1085_v29, %v1085_v29  ;;  %v1176_v14 = vcombine.high %v675_v31, %v675_v31 }
 0x239   : > { %v1183_v17 = vrot.slane %v675_v31, %v2465_v26  ;;  %v2474_v37 = vrot.slane %v1085_v29, %v2465_v26  ;;  %v2483_v25 = vrot.slane %v1094_v34, %v2465_v26  ;;  %v2493_v43 = vrot.slane %v1142_v36, %v2465_v26 }
 0x23a   : > { %2164 = vpow2.f32 %v703_v47  ;;  %v2480_v38 = vrot.slane %v1093_v33, %v2465_v26  ;;  %v1190_v39 = vrot.slane %v1176_v14, %v2465_v26  ;;  %v1124_v46 = vcombine.high %v2477_v21, %v2477_v21 }
 0x23b   : > { %2166 = vpow2.f32 %v705_v48  ;;  %v1191_v44 = vcombine.high %v1183_v17, %v1183_v17  ;;  %v1123_v45 = vcombine.high %v2474_v37, %v2474_v37  ;;  %v1126_v48 = vcombine.high %v2483_v25, %v2483_v25 }
 0x23c   : > { %v1125_v47 = vcombine.high %v2480_v38, %v2480_v38 }
 0x23f   : > { %v2161_v49 = vpop.eup %2160 }
 0x240   : > { %v2163_v50 = vpop.eup %2162 }
 0x241   : > { %v707_v51 = vadd.f32 %v2163_v50, %v2161_v49 }
 0x243   : > { %v708_v52 = vrot.slane %v707_v51, 4 }
 0x245   : > { %v709_v53 = vadd.f32 %v708_v52, %v707_v51  ;;  %v1143_v52 = vcombine.high %v2487_v40, %v2487_v40 }
 0x247   : > { %v710_v54 = vrot.slane %v709_v53, 2  ;;  %v2165_v55 = vpop.eup %2164 }
 0x248   : > { %v2167_v57 = vpop.eup %2166 }
 0x249   : > { %v711_v56 = vadd.f32 %v710_v54, %v709_v53  ;;  %v714_v58 = vadd.f32 %v2167_v57, %v2165_v55  ;;  %v1225_v53 = vcombine.high %v679_v41, %v679_v41 }
 0x24b   : > { %v712_v59 = vrot.slane %v711_v56, 1  ;;  %v715_v60 = vrot.slane %v714_v58, 4 }
 0x24d   : > { %v713_v61 = vadd.f32 %v712_v59, %v711_v56  ;;  %v716_v62 = vadd.f32 %v715_v60, %v714_v58  ;;  %v1172_v56 = vcombine.high %v2490_v42, %v2490_v42  ;;  %v1213_v58 = vrot.slane %v1191_v44, %v2465_v26 }
 0x24e   : > { %v1232_v59 = vrot.slane %v679_v41, %v2465_v26 }
 0x24f   : > { %2168 = vrcp.f32 %v713_v61  ;;  %v717_v63 = vrot.slane %v716_v62, 2 }
 0x250   : > { %v2529_v32 = vrot.slane %v1232_v59, %v2465_v26 }
 0x251   : > { %v718_v0 = vadd.f32 %v717_v63, %v716_v62 }
 0x253   : > { %v719_v1 = vrot.slane %v718_v0, 1 }
 0x255   : > { %v720_v2 = vadd.f32 %v719_v1, %v718_v0  ;;  %v1206_v1 = vrot.slane %v1190_v39, %v2465_v26 }
 0x257   : > { %2170 = vrcp.f32 %v720_v2  ;;  %v1222_v29 = vcombine.high %v1206_v1, %v1206_v1 }
 0x25c   : > { %v2169_v3 = vpop.eup %2168 }
 0x25d   : > { %v723_v4 = vmul.f32 %v2169_v3, %v2161_v49  ;;  %v724_v5 = vmul.f32 %v2169_v3, %v2163_v50  ;;  %v1192_v49 = vcombine.high %v1190_v39, %v1190_v39  ;;  %v1199_v50 = vrot.slane %v1183_v17, %v2465_v26 }
 0x25f   : > { %v727_v6 = vpack.c.bf16 %v724_v5, %v723_v4  ;;  %v1220_v2 = vrot.slane %v1192_v49, %v2465_v26  ;;  %v1221_v3 = vcombine.high %v1199_v50, %v1199_v50  ;;  %v2519_v5 = vrot.slane %v1225_v53, %v2465_v26 }
 0x261   : > { %2041 = vmatprep.mubr.bf16.mxu1 %v727_v6  ;;  %v1224_v30 = vcombine.high %v1220_v2, %v1220_v2  ;;  %v1241_v31 = vcombine.high %v2519_v5, %v2519_v5 }
 0x264   : > { %v2171_v7 = vpop.eup %2170 }
 0x265   : > { %v725_v8 = vmul.f32 %v2171_v7, %v2165_v55  ;;  %v726_v9 = vmul.f32 %v2171_v7, %v2167_v57  ;;  %v1174_v57 = vcombine.high %v2493_v43, %v2493_v43 }
 0x267   : > { %v728_v10 = vpack.c.bf16 %v726_v9, %v725_v8  ;;  %v1223_v9 = vcombine.high %v1213_v58, %v1213_v58 }
 0x269   : > { %2042 = vmatmul.mubr.bf16.vlgmr.msra.gmra.mxu1 %v728_v10  ;;  %v1240_v10 = vcombine.high %v1232_v59, %v1232_v59 }
 0x26b   : > { %v2532_v33 = vrot.slane %v1240_v10, %v2465_v26 }
 0x329   : > { %v2043_v51 = vpop.f32.mrf.mxu1 }
 0x32a   : > { %v944_v54 = vcombine.high %v2043_v51, %v2043_v51  ;;  %v951_v55 = vrot.slane %v2043_v51, %v2465_v26 }
 0x32b   : > { %v827_v60 = vpop.f32.mrf.mxu1 }
 0x32c   : > { %v958_v61 = vrot.slane %v944_v54, %v2465_v26  ;;  %v959_v62 = vcombine.high %v951_v55, %v951_v55  ;;  %v967_v63 = vrot.slane %v951_v55, %v2465_v26  ;;  %v846_v0 = vcombine.high %v827_v60, %v827_v60 }
 0x32d   : > { %v853_v4 = vrot.slane %v827_v60, %v2465_v26 }
 0x32e   : > { %v960_v6 = vcombine.high %v958_v61, %v958_v61  ;;  %v981_v7 = vrot.slane %v959_v62, %v2465_v26  ;;  %v989_v8 = vcombine.high %v967_v63, %v967_v63  ;;  %v1322_v11 = vmul.f32 %v1199_v50, %v967_v63 }
 0x32f   : > { %v974_v16 = vrot.slane %v958_v61, %v2465_v26  ;;  %v860_v22 = vrot.slane %v846_v0, %v2465_v26  ;;  %v861_v27 = vcombine.high %v853_v4, %v853_v4  ;;  %v869_v28 = vrot.slane %v853_v4, %v2465_v26 }
 0x330   : > { %v991_v19 = vcombine.high %v981_v7, %v981_v7  ;;  %v1323_v20 = vmul.f32 %v1213_v58, %v981_v7  ;;  %v988_v23 = vrot.slane %v960_v6, %v2465_v26  ;;  %v1324_v24 = vmul.f32 %v1221_v3, %v989_v8 }
 0x331   : > { %v1370_v14 = vsel %vm1338_vm2, %v1322_v11, 0.0  ;;  %v990_v36 = vcombine.high %v974_v16, %v974_v16  ;;  %v1326_v17 = vmul.f32 %v1206_v1, %v974_v16  ;;  %v862_v39 = vcombine.high %v860_v22, %v860_v22 }
 0x332   : > { %v1325_v34 = vmul.f32 %v1223_v9, %v991_v19  ;;  %v1371_v35 = vsel %vm1338_vm2, %v1323_v20, 0.0  ;;  %v992_v41 = vcombine.high %v988_v23, %v988_v23  ;;  %v1373_v44 = vsel %vm1338_vm2, %v1324_v24, 0.0 }
 0x333   : > { %v1372_v12 = vadd.f32 %v1371_v35, %v1370_v14  ;;  %v883_v49 = vrot.slane %v861_v27, %v2465_v26  ;;  %v891_v50 = vcombine.high %v869_v28, %v869_v28  ;;  %v1327_v51 = vmul.f32 %v1220_v2, %v988_v23  ;;  %v2044_v2 = vpop.f32.mrf.mxu1 }
 0x334   : > { %v876_v54 = vrot.slane %v860_v22, %v2465_v26  ;;  %v1306_v55 = vmul.f32 %v2474_v37, %v869_v28  ;;  %v1375_v58 = vsel %vm1338_vm2, %v1325_v34, 0.0  ;;  %v1270_v62 = vcombine.high %v2529_v32, %v2529_v32 }
 0x335   : > { %v1374_v53 = vadd.f32 %v1373_v44, %v1372_v12  ;;  %v893_v59 = vcombine.high %v883_v49, %v883_v49  ;;  %v1307_v60 = vmul.f32 %v2480_v38, %v883_v49  ;;  %v1308_v61 = vmul.f32 %v1123_v45, %v891_v50  ;;  %v830_v23 = vpop.f32.mrf.mxu1 }
 0x336   : > { %v1328_v63 = vmul.f32 %v1222_v29, %v990_v36  ;;  %v1377_v1 = vsel %vm1338_vm2, %v1326_v17, 0.0  ;;  %v1329_v3 = vmul.f32 %v1224_v30, %v992_v41  ;;  %v1339_v6 = vsel %vm1338_vm2, %v1306_v55, 0.0 }
 0x337   : > { %v1376_v0 = vadd.f32 %v1375_v58, %v1374_v53  ;;  %v1309_v4 = vmul.f32 %v1125_v47, %v893_v59  ;;  %v1340_v7 = vsel %vm1338_vm2, %v1307_v60, 0.0  ;;  %v890_v37 = vrot.slane %v862_v39, %v2465_v26 }
 0x338   : > { %v1310_v45 = vmul.f32 %v2477_v21, %v876_v54  ;;  %v1341_v9 = vadd.f32 %v1340_v7, %v1339_v6  ;;  %v1379_v10 = vsel %vm1338_vm2, %v1327_v51, 0.0  ;;  %v1342_v11 = vsel %vm1338_vm2, %v1308_v61, 0.0 }
 0x339   : > { %v1378_v8 = vadd.f32 %v1377_v1, %v1376_v0  ;;  %v993_v16 = vcombine.high %v2044_v2, %v2044_v2  ;;  %v1000_v19 = vrot.slane %v2044_v2, %v2465_v26  ;;  %v1381_v38 = vsel %vm1338_vm2, %v1328_v63, 0.0 }
 0x33a   : > { %v892_v47 = vcombine.high %v876_v54, %v876_v54  ;;  %v1343_v22 = vadd.f32 %v1342_v11, %v1341_v9  ;;  %v1344_v24 = vsel %vm1338_vm2, %v1309_v4, 0.0  ;;  %v1311_v30 = vmul.f32 %v2483_v25, %v890_v37 }
 0x33b   : > { %v1380_v20 = vadd.f32 %v1379_v10, %v1378_v8  ;;  %v1007_v27 = vrot.slane %v993_v16, %v2465_v26  ;;  %v1008_v28 = vcombine.high %v1000_v19, %v1000_v19  ;;  %v1016_v29 = vrot.slane %v1000_v19, %v2465_v26 }
 0x33c   : > { %v1345_v34 = vadd.f32 %v1344_v24, %v1343_v22  ;;  %v1346_v14 = vsel %vm1338_vm2, %v1310_v45, 0.0  ;;  %v1383_v12 = vsel %vm1338_vm2, %v1329_v3, 0.0  ;;  %v902_v39 = vrot.slane %v830_v23, %v2465_v26 }
 0x33d   : > { %v1382_v35 = vadd.f32 %v1381_v38, %v1380_v20  ;;  %v1030_v36 = vrot.slane %v1008_v28, %v2465_v26  ;;  %v1038_v17 = vcombine.high %v1016_v29, %v1016_v29  ;;  %v894_v41 = vcombine.high %v890_v37, %v890_v37 }
 0x33e   : > { %v1347_v44 = vadd.f32 %v1346_v14, %v1345_v34  ;;  %v1330_v49 = vmul.f32 %v2529_v32, %v1016_v29  ;;  %v1312_v51 = vmul.f32 %v1124_v46, %v892_v47  ;;  %v1009_v53 = vcombine.high %v1007_v27, %v1007_v27 }
 0x33f   : > { %v1384_v50 = vadd.f32 %v1383_v12, %v1382_v35  ;;  %v1040_v54 = vcombine.high %v1030_v36, %v1030_v36  ;;  %v1331_v55 = vmul.f32 %v2532_v33, %v1030_v36  ;;  %v1272_v58 = vcombine.high %v2532_v33, %v2532_v33 }
 0x340   : > { %v1348_v59 = vsel %vm1338_vm2, %v1311_v30, 0.0  ;;  %v1023_v60 = vrot.slane %v1007_v27, %v2465_v26  ;;  %v895_v61 = vcombine.high %v830_v23, %v830_v23  ;;  %v1332_v0 = vmul.f32 %v1270_v62, %v1038_v17 }
 0x341   : > { %v1349_v63 = vadd.f32 %v1348_v59, %v1347_v44  ;;  %v1385_v32 = vsel %vm1338_vm2, %v1330_v49, 0.0  ;;  %v910_v1 = vcombine.high %v902_v39, %v902_v39  ;;  %v1255_v21 = vrot.slane %v2519_v5, %v2465_v26 }
 0x342   : > { %v1269_v46 = vrot.slane %v1241_v31, %v2465_v26  ;;  %v1313_v33 = vmul.f32 %v1126_v48, %v894_v41  ;;  %v1386_v2 = vadd.f32 %v1385_v32, %v1384_v50  ;;  %v1350_v3 = vsel %vm1338_vm2, %v1312_v51, 0.0 }
 0x343   : > { %v1037_v62 = vrot.slane %v1009_v53, %v2465_v26  ;;  %v1333_v4 = vmul.f32 %v1272_v58, %v1040_v54  ;;  %v1387_v6 = vsel %vm1338_vm2, %v1331_v55, 0.0  ;;  %v1039_v7 = vcombine.high %v1023_v60, %v1023_v60 }
 0x344   : > { %v1388_v8 = vadd.f32 %v1387_v6, %v1386_v2  ;;  %v909_v37 = vrot.slane %v895_v61, %v2465_v26  ;;  %v918_v45 = vrot.slane %v902_v39, %v2465_v26  ;;  %v1334_v5 = vmul.f32 %v1255_v21, %v1023_v60 }
 0x345   : > { %v1389_v31 = vsel %vm1338_vm2, %v1332_v0, 0.0  ;;  %v932_v25 = vrot.slane %v910_v1, %v2465_v26  ;;  %v1351_v48 = vadd.f32 %v1350_v3, %v1349_v63  ;;  %v1271_v9 = vcombine.high %v1255_v21, %v1255_v21 }
 0x346   : > { %v1390_v10 = vadd.f32 %v1389_v31, %v1388_v8  ;;  %v940_v11 = vcombine.high %v918_v45, %v918_v45  ;;  %v1352_v16 = vsel %vm1338_vm2, %v1313_v33, 0.0  ;;  %v1041_v19 = vcombine.high %v1037_v62, %v1037_v62 }
 0x347   : > { %v1335_v20 = vmul.f32 %v1269_v46, %v1037_v62  ;;  %v1391_v38 = vsel %vm1338_vm2, %v1333_v4, 0.0  ;;  %v1314_v47 = vmul.f32 %v2490_v42, %v918_v45  ;;  %v911_v23 = vcombine.high %v909_v37, %v909_v37 }
 0x348   : > { %v1392_v22 = vadd.f32 %v1391_v38, %v1390_v10  ;;  %v942_v24 = vcombine.high %v932_v25, %v932_v25  ;;  %v1315_v27 = vmul.f32 %v2493_v43, %v932_v25  ;;  %v1273_v28 = vcombine.high %v1269_v46, %v1269_v46  ;;  %v1965_v10 = vld [vmem:[%s2777_s8] ss:$0 sm:$0xff] }
 0x349   : > { %v1336_v29 = vmul.f32 %v1271_v9, %v1039_v7  ;;  %v1393_v30 = vsel %vm1338_vm2, %v1334_v5, 0.0  ;;  %v1353_v34 = vadd.f32 %v1352_v16, %v1351_v48  ;;  %v925_v35 = vrot.slane %v909_v37, %v2465_v26 }
 0x34a   : > { %v1394_v14 = vadd.f32 %v1393_v30, %v1392_v22  ;;  %v1316_v36 = vmul.f32 %v1172_v56, %v940_v11  ;;  %v1354_v17 = vsel %vm1338_vm2, %v1314_v47, 0.0  ;;  %v1157_v12 = vrot.slane %v2487_v40, %v2465_v26 }
 0x34b   : > { %v1337_v39 = vmul.f32 %v1273_v28, %v1041_v19  ;;  %v1395_v41 = vsel %vm1338_vm2, %v1335_v20, 0.0  ;;  %v1355_v44 = vadd.f32 %v1354_v17, %v1353_v34  ;;  %v939_v50 = vrot.slane %v911_v23, %v2465_v26  ;;  %v1477_v23 = vld [vmem:[%s2795_s1] sm:$0x1] }
 0x34c   : > { %v1396_v49 = vadd.f32 %v1395_v41, %v1394_v14  ;;  %v1317_v51 = vmul.f32 %v1174_v57, %v942_v24  ;;  %v1356_v53 = vsel %vm1338_vm2, %v1315_v27, 0.0  ;;  %v1171_v42 = vrot.slane %v1143_v52, %v2465_v26 }
 0x34d   : > { %v1397_v56 = vsel %vm1338_vm2, %v1336_v29, 0.0  ;;  %v1357_v54 = vadd.f32 %v1356_v53, %v1355_v44  ;;  %v941_v58 = vcombine.high %v925_v35, %v925_v35  ;;  %v1318_v59 = vmul.f32 %v1157_v12, %v925_v35 }
 0x34e   : > { %v1398_v55 = vadd.f32 %v1397_v56, %v1396_v49  ;;  %v1358_v60 = vsel %vm1338_vm2, %v1316_v36, 0.0  ;;  %v1173_v61 = vcombine.high %v1157_v12, %v1157_v12  ;;  %v1399_v63 = vsel %vm1338_vm2, %v1337_v39, 0.0 }
 0x34f   : > { %v1359_v43 = vadd.f32 %v1358_v60, %v1357_v54  ;;  %v943_v57 = vcombine.high %v939_v50, %v939_v50  ;;  %v1319_v0 = vmul.f32 %v1171_v42, %v939_v50  ;;  %v1360_v32 = vsel %vm1338_vm2, %v1317_v51, 0.0  ;;  %v2142_v54 = vld [vmem:[%s2780_s11 + $0x8] sm:$0xff]  }
 0x350   : > { %v1400_v1 = vadd.f32 %v1399_v63, %v1398_v55  ;;  %v1175_v40 = vcombine.high %v1171_v42, %v1171_v42  ;;  %v1320_v52 = vmul.f32 %v1173_v61, %v941_v58  ;;  %v1362_v46 = vsel %vm1338_vm2, %v1318_v59, 0.0  ;;  %v2143_v55 = vld [vmem:[%s2780_s11] sm:$0xff]  }
 0x351   : > { %v1361_v21 = vadd.f32 %v1360_v32, %v1359_v43  ;;  %v1364_v62 = vsel %vm1338_vm2, %v1319_v0, 0.0  ;;  %v1969_v61 = vld [vmem:[%s2778_s9] ss:$0 sm:$0xff] }
 0x352   : > { %v1402_v2 = vpack.c.bf16 %v1400_v1, %v1400_v1  ;;  %v1321_v3 = vmul.f32 %v1175_v40, %v943_v57  ;;  %v1366_v6 = vsel %vm1338_vm2, %v1320_v52, 0.0  ;;  %v1970_v63 = vld [vmem:[%s2779_s10] ss:$0 sm:$0xff]  ;;  %v1592_v43 = vrot.slane %v1969_v61, %v2465_v26 }
 0x353   : > { %v1363_v33 = vadd.f32 %v1362_v46, %v1361_v21  ;;  %v1624_v57 = vrot.slane %v1970_v63, %v2465_v26 }
 0x354   : > { %v1417_v8 = vunpack.c.l.b16 %v1402_v2  ;;  %v1368_v37 = vsel %vm1338_vm2, %v1321_v3, 0.0  ;;  %v1593_v0 = vcombine.high %v1592_v43, %v1592_v43  ;;  %v1600_v21 = vrot.slane %v1592_v43, %v2465_v26 }
 0x355   : > { %v1365_v4 = vadd.f32 %v1364_v62, %v1363_v33  ;;  %v1625_v32 = vcombine.high %v1624_v57, %v1624_v57  ;;  %v1632_v3 = vrot.slane %v1624_v57, %v2465_v26 }
 0x356   : > { %v1418_v31 = vrot.slane %v1417_v8, 7  ;;  %v1607_v40 = vrot.slane %v1593_v0, %v2465_v26 }
 0x357   : > { %v1367_v7 = vadd.f32 %v1366_v6, %v1365_v4  ;;  %v1639_v62 = vrot.slane %v1625_v32, %v2465_v26 }
 0x359   : > { %v1369_v45 = vadd.f32 %v1368_v37, %v1367_v7 }
 0x35b   : > { %v1401_v5 = vpack.c.bf16 %v1369_v45, %v1369_v45 }
 0x35d   : > { %v1416_v25 = vunpack.c.l.b16 %v1401_v5 }
 0x35f   : > { %v1420_v48 = vsel %vm1419_vm3, %v1418_v31, %v1416_v25 }
 0x360   : > { %v1421_v9 = vpack.c.b16 %v1420_v48, %v1420_v48 }
 0x362   : > { %2050 = vmatmul.mubr.msk.bf16.vlgmr.msra.gmra.mxu0 %vm508_vm0, %v1421_v9  ;;  %v2145_v9 = vld [vmem:[%s2782_s13 + $0x30] sm:$0xff]  }
 0x363   : > { %2057 = vmatprep.mubr.msk.bf16.mxu0 %vm2240_vm1, %v2239_v15  ;;  %2054 = vmatpush3.bf16.msra.mxu0 %v2142_v54 }
 0x364   : > { %2055 = vmatprep.subr.bf16.mxu0 %v2239_v15 }
 0x367   : > { %2056 = vmatpush3.bf16.msra.mxu0 %v2143_v55 }
 0x368   : > { %2061 = vmatprep.subr.bf16.mxu0 %v2239_v15 }
 0x422   : > { %v1471_v11 = vpop.f32.mrf.mxu0 }
 0x423   : > { %v1472_v16 = vadd.f32 %v1965_v10, %v1471_v11  ;;  %v2146_v10 = vld [vmem:[%s2782_s13 + $0x28] sm:$0xff]   ;;  %v2147_v11 = vld [vmem:[%s2782_s13 + $0x20] sm:$0xff]  }
 0x424   : > { %v2051_v19 = vpop.f32.mrf.mxu0 }
 0x425   : > { %v1485_v20 = vrot.slane %v1472_v16, %v2465_v26  ;;  %v2148_v16 = vld [vmem:[%s2782_s13 + $0x18] sm:$0xff]   ;;  %v2149_v19 = vld [vmem:[%s2782_s13 + $0x10] sm:$0xff]  }
 0x426   : > { %v1474_v38 = vpop.f32.mrf.mxu0 }
 0x427   : > { %v1486_v47 = vcombine.high %v1485_v20, %v1485_v20  ;;  %v1493_v22 = vrot.slane %v1485_v20, %v2465_v26  ;;  %v2150_v20 = vld [vmem:[%s2782_s13 + $0x8] sm:$0xff]   ;;  %v2151_v38 = vld [vmem:[%s2782_s13] sm:$0xff]  }
 0x428   : > { %v2052_v24 = vpop.f32.mrf.mxu0 }
 0x429   : > { %v1500_v27 = vrot.slane %v1486_v47, %v2465_v26  ;;  %v2636_v28 = vadd.f32 %v1493_v22, %v1477_v23  ;;  %v1971_v47 = vld [vmem:[%s2781_s12] ss:$0 sm:$0xff] }
 0x42b   : > { %v2638_v29 = vadd.f32 %v1500_v27, %v1477_v23 }
 0x42d   : > { %v1507_v30 = vcombine.low %v2636_v28, %v2638_v29 }
 0x42f   : > { %v1514_v34 = vrot.slane %v1507_v30, %v2465_v26 }
 0x431   : > { %v1521_v14 = vrot.slane %v1514_v34, %v2465_v26 }
 0x433   : > { %v1524_v35 = vsel %vm1523_vm4, %v1521_v14, 0.0 }
 0x434   : > { %1525 = vadd.xlane.f32.xlu0 %v1524_v35 }
 0x4bd   : > { %v1526_v36 = vpop.xlane.xlu0 %1525 }
 0x4be   : > { %v1527_v17 = vmul.f32 0.03125, %v1526_v36 }
 0x4c0   : > { %v1532_v12 = vrot.slane %v1527_v17, %v2432_v13  ;;  %v1536_v39 = vrot.slane %v1527_v17, %v2459_v18 }
 0x4c2   : > { %v1539_v41 = vsub.f32 %v2636_v28, %v1532_v12  ;;  %v1540_v44 = vsub.f32 %v2638_v29, %v1536_v39 }
 0x4c4   : > { %v1541_v49 = vmul.f32 %v1539_v41, %v1539_v41  ;;  %v1542_v50 = vmul.f32 %v1540_v44, %v1540_v44 }
 0x4c6   : > { %v1545_v51 = vcombine.low %v1541_v49, %v1542_v50 }
 0x4c8   : > { %v1552_v53 = vrot.slane %v1545_v51, %v2465_v26 }
 0x4ca   : > { %v1559_v42 = vrot.slane %v1552_v53, %v2465_v26 }
 0x4cc   : > { %v1561_v56 = vsel %vm1523_vm4, %v1559_v42, 0.0 }
 0x4cd   : > { %1562 = vadd.xlane.f32.xlu1 %v1561_v56 }
 0x556   : > { %v1563_v58 = vpop.xlane.xlu1 %1562 }
 0x557   : > { %v1564_v59 = vmul.f32 0.03125, %v1563_v58 }
 0x559   : > { %v1565_v60 = vadd.f32 1e-05, %v1564_v59 }
 0x55b   : > { %2172 = vrsqrt.f32 %v1565_v60 }
 0x568   : > { %v2173_v1 = vpop.eup %2172 }
 0x569   : > { %v1571_v52 = vrot.slane %v2173_v1, %v2432_v13  ;;  %v1575_v46 = vrot.slane %v2173_v1, %v2459_v18  ;;  %v2144_v13 = vld [vmem:[%s2782_s13 + $0x38] sm:$0xff]  }
 0x56b   : > { %v1578_v33 = vmul.f32 %v1571_v52, %v1539_v41  ;;  %v1579_v2 = vmul.f32 %v1575_v46, %v1540_v44 }
 0x56d   : > { %v1610_v4 = vmul.f32 %v1600_v21, %v1578_v33  ;;  %v1611_v6 = vmul.f32 %v1607_v40, %v1579_v2 }
 0x56f   : > { %v1642_v7 = vadd.f32 %v1632_v3, %v1610_v4  ;;  %v1643_v8 = vadd.f32 %v1639_v62, %v1611_v6 }
 0x571   : > { %v1644_v37 = vpack.c.bf16 %v1642_v7, %v1642_v7  ;;  %v1645_v45 = vpack.c.bf16 %v1643_v8, %v1643_v8 }
 0x573   : > { %v1660_v5 = vunpack.c.l.b16 %v1645_v45  ;;  %v1659_v31 = vunpack.c.l.b16 %v1644_v37 }
 0x575   : > { %v1661_v25 = vrot.slane %v1660_v5, 7 }
 0x577   : > { %v1662_v48 = vsel %vm1419_vm3, %v1661_v25, %v1659_v31 }
 0x578   : > { %v1663_v18 = vpack.c.b16 %v1662_v48, %v1662_v48 }
 0x57a   : > { %2058 = vmatmul.mubr.msk.bf16.vlgmr.msra.gmra.mxu0 %vm508_vm0, %v1663_v18 }
 0x57b   : > { %2062 = vmatpush3.bf16.msra.mxu0 %v2144_v13  ;;  %2077 = vmatprep.mubr.msk.bf16.mxu0 %vm2240_vm1, %v2239_v15 }
 0x57c   : > { %2063 = vmatprep.subr.bf16.mxu0 %v2239_v15 }
 0x57f   : > { %2064 = vmatpush3.bf16.msra.mxu0 %v2145_v9 }
 0x580   : > { %2065 = vmatprep.subr.bf16.mxu0 %v2239_v15 }
 0x583   : > { %2066 = vmatpush3.bf16.msra.mxu0 %v2146_v10 }
 0x584   : > { %2067 = vmatprep.subr.bf16.mxu0 %v2239_v15 }
 0x587   : > { %2068 = vmatpush3.bf16.msra.mxu0 %v2147_v11 }
 0x588   : > { %2069 = vmatprep.subr.bf16.mxu0 %v2239_v15 }
 0x58b   : > { %2070 = vmatpush3.bf16.msra.mxu0 %v2148_v16 }
 0x58c   : > { %2071 = vmatprep.subr.bf16.mxu0 %v2239_v15 }
 0x58f   : > { %2072 = vmatpush3.bf16.msra.mxu0 %v2149_v19 }
 0x590   : > { %2073 = vmatprep.subr.bf16.mxu0 %v2239_v15 }
 0x593   : > { %2074 = vmatpush3.bf16.msra.mxu0 %v2150_v20 }
 0x594   : > { %2075 = vmatprep.subr.bf16.mxu0 %v2239_v15  ;;  %v1975_v15 = vld [vmem:[%s2783_s14] ss:$0 sm:$0xff] }
 0x597   : > { %2076 = vmatpush3.bf16.msra.mxu0 %v2151_v38 }
 0x63a   : > { %v1713_v22 = vpop.f32.mrf.mxu0 }
 0x63b   : > { %v1714_v23 = vadd.f32 %v1971_v47, %v1713_v22 }
 0x63c   : > { %v2059_v24 = vpop.f32.mrf.mxu0 }
 0x63d   : > { %v1720_v27 = vmul.f32 0.70710677, %v1714_v23  ;;  %v1719_v35 = vmul.f32 0.5, %v1714_v23 }
 0x63e   : > { %v1716_v30 = vpop.f32.mrf.mxu0 }
 0x63f   : > { %2174 = verf.f32 %v1720_v27 }
 0x640   : > { %v2060_v34 = vpop.f32.mrf.mxu0 }
 0x64c   : > { %v2175_v14 = vpop.eup %2174 }
 0x64d   : > { %v1722_v36 = vadd.f32 1.0, %v2175_v14 }
 0x64f   : > { %v1723_v17 = vmul.f32 %v1722_v36, %v1719_v35 }
 0x651   : > { %v1724_v12 = vpack.c.bf16 %v1723_v17, %v1723_v17 }
 0x653   : > { %2078 = vmatmul.mubr.bf16.vlgmr.msra.gmra.mxu0 %v1724_v12 }
 0x713   : > { %v1830_v39 = vpop.f32.mrf.mxu0 }
 0x714   : > { %v1831_v41 = vadd.f32 %v1975_v15, %v1830_v39 }
 0x715   : > { %v2079_v44 = vpop.f32.mrf.mxu0 }
 0x716   : > { %v1843_v49 = vrot.slane %v1831_v41, %v2465_v26 }
 0x717   : > { %v1833_v50 = vpop.f32.mrf.mxu0 }
 0x718   : > { %v1844_v51 = vcombine.high %v1843_v49, %v1843_v49  ;;  %v1851_v53 = vrot.slane %v1843_v49, %v2465_v26 }
 0x719   : > { %v2080_v42 = vpop.f32.mrf.mxu0 }
 0x71a   : > { %v1858_v56 = vrot.slane %v1844_v51, %v2465_v26  ;;  %v1861_v54 = vadd.f32 %v1851_v53, %v2636_v28 }
 0x71c   : > { %v1862_v55 = vadd.f32 %v1858_v56, %v2638_v29  ;;  %1863 = vst.msk [vmem:[%s490_s17] sm:$0x1] %vm1338_vm2, %v1861_v54 }
 0x71e   : > { %1864 = vst.msk [vmem:[%s490_s17 + $0x1] sm:$0x1] %vm1338_vm2, %v1862_v55 }
 0x71f   : > { %2189 = shalt.err (!%p2186_p3)
}
 0x720   : > { %s2190_s0 = scalar_lea.hbm %s2722_s26, 32  ;;  %s2194_s16 = scalar_lea.hbm %s2784_s15, 64 }
 0x721   : > { %p2191_p4 = scmp.ne.s32.totalorder %s2722_s26, %s2190_s0  ;;  %p2195_p9 = scmp.lt.s32.totalorder %s2722_s26, %s2784_s15 }
 0x722   : > { %p2196_p10 = scmp.lt.s32.totalorder %s2194_s16, %s2190_s0 }
 0x723   : > { %p2192_p7 = pnand %p2191_p4, %p2363_p5 }
 0x724   : > { %p2197_p11 = por %p2196_p10, %p2195_p9 }
 0x725   : > { %p2193_p8 = pneg %p2192_p7 }
 0x727   : > { %p2198_p12 = pnand %p2197_p11, %p2193_p8 }
 0x729   : > { %2201 = shalt.err (!%p2198_p12)
}
 0x72a   : > { %s2243_s30 = smov 16   ;;  %s2244_s25 = smov 1  }
 0x72b   : > { %2081 = dma.vmem_to_hbm [thread:$0]  (%p2363_p5), %s2724_s23, 32, %s2722_s26, %s2729_s22, %s2243_s30, %s2243_s30, %s2244_s25  }
 0x72c PF: > { %p2087_p13 = scmp.ge.s32.totalorder %s2236_s21, 2  ;;  %s1894_s1 = sand.u32 1, %s2224_s18  }
 0x72d   : > { %s1895_s2 = scalar_lea.sflag [#allocation3], %s1894_s1 }
 0x72e   : > { %p2084_p0 = pnand %p2087_p13, %p2367_p6 }
 0x730   : > { %p2085_p1 = pneg %p2084_p0 }
 0x732   : > { %2219 = dma.done.wait (%p2085_p1), %s1895_s2, 32  }
 0x733   : > { %2221 = vsyncadd (%p2085_p1), %s1895_s2, 4294967264  ;;  %s2796_s3 = sld [smem:[#allocation5_spill]]  ;;  %p25_p2 = scmp.ge.s32.totalorder %s2350_s24, 4  }
 0x734   : > { %s2797_s18 = smov %s2228_s19  ;;  %s2798_s19 = smov %s2232_s20 }
 0x735   : > { %s2800_s21 = smov %s2350_s24  ;;  %27 = sbr.rel (!%p25_p2) target bundleno = 8 (0x8), region = 115 }
 0x739   : > { %s2799_s20 = smov %s2796_s3 }
 0x73a   :  { %1900 = vsyncpa [#allocation3], 1 }
 0x73b   :  { %1902 = vsyncpa [#allocation3 + $0x1], 1 }

</bundles_post_ra>
